<compile_context>
chip_gen: v7x
topology: tpu7x:2x2x1
jax: 0.10.0
libtpu: 0.0.40
codegen_flags: <defaults>
</compile_context>

<pallas_src>
import functools

import jax
import jax.numpy as jnp
from jax.experimental import pallas as pl
from jax.experimental.pallas import tpu as pltpu

_NEG = float(jnp.finfo(jnp.float32).min)


def _round_up(x, m):
    return (x + m - 1) // m * m


def _default_vmem_limit():
    # v5e/v6e: 128 MiB physical -> use ~100 MiB; v7x: 64 MiB -> ~56 MiB.
    try:
        cap = int(pltpu.get_tpu_info().vmem_capacity_bytes)
        return max(32 << 20, min(cap - (8 << 20), 100 << 20))
    except Exception:  # conservative fallback that fits every chip
        return 48 << 20


# ----------------------------------------------------------------------------
# Row-wise top-k selection (value desc, ties -> lowest index; matches
# lax.top_k / torch.topk ordering).
# ----------------------------------------------------------------------------
def _select_topk(vals, idx, *, k, kpad, idx_sentinel):
    """Per-row top-k of (vals, idx) candidate pairs.

    Iterative extraction with a lexicographic (value, index) threshold: only
    `vals`/`idx` stay live across passes (no concatenated work-array rewrite),
    which keeps register / VMEM pressure far below the old version.
    Returns ([TB, kpad] f32, [TB, kpad] i32); cols [k:kpad] are lane padding.
    """
    TB = vals.shape[0]
    out_v, out_i = [], []
    prev_v = prev_i = None
    # TODO(synk): for large k (e.g. auxk=256) switch to a lax.fori_loop writing
    # into a VMEM scratch column to bound unrolled code size.
    for t in range(k):
        if t == 0:
            m = jnp.max(vals, axis=-1, keepdims=True)
            i = jnp.min(jnp.where(vals == m, idx, idx_sentinel),
                        axis=-1, keepdims=True)
        else:
            elig = (vals < prev_v) | ((vals == prev_v) & (idx > prev_i))
            m = jnp.max(jnp.where(elig, vals, _NEG), axis=-1, keepdims=True)
            i = jnp.min(jnp.where(elig & (vals == m), idx, idx_sentinel),
                        axis=-1, keepdims=True)
        out_v.append(m)
        out_i.append(i)
        prev_v, prev_i = m, i
    if kpad > k:
        out_v.append(jnp.full((TB, kpad - k), _NEG, jnp.float32))
        out_i.append(jnp.full((TB, kpad - k), idx_sentinel, jnp.int32))
    return jnp.concatenate(out_v, axis=1), jnp.concatenate(out_i, axis=1)


def _tile_topk(vals, base, *, k, kpad, idx_sentinel):
    TB, TD = vals.shape
    idx = jax.lax.broadcasted_iota(jnp.int32, (TB, TD), 1) + base
    return _select_topk(vals, idx, k=k, kpad=kpad, idx_sentinel=idx_sentinel)


def _merge_topk(v_new, i_new, v_res, i_res, *, k, kpad, idx_sentinel):
    return _select_topk(jnp.concatenate([v_new, v_res], axis=1),
                        jnp.concatenate([i_new, i_res], axis=1),
                        k=k, kpad=kpad, idx_sentinel=idx_sentinel)


# ----------------------------------------------------------------------------
# Kernel 1: encoder matmul (bf16 -> f32) + two-stage running top-k.
# grid = (batch tiles [parallel], n_dirs tiles [arbitrary])
# ----------------------------------------------------------------------------
def _encode_topk_kernel(x_ref, lat_b_ref, w_enc_ref, *out_refs,
                        k, kpad, n_dirs, emit_latents):
    vals_ref, inds_ref = out_refs[0], out_refs[1]
    j = pl.program_id(1)
    td = w_enc_ref.shape[0]
    idx_sentinel = n_dirs + kpad

    # bf16 x bf16 -> f32 MXU matmul, contracting d_model against stored layout.
    lat = jax.lax.dot_general(
        x_ref[...], w_enc_ref[...], (((1,), (1,)), ((), ())),
        preferred_element_type=jnp.float32) + lat_b_ref[...]          # [TB, TD]

    if emit_latents:
        out_refs[2][...] = lat.astype(out_refs[2].dtype)              # bf16 store

    # Stage 1: top-k inside this tile.  Stage 2: narrow [TB, 2*kpad] merge with
    # the resident per-row candidate buffer (output block constant along j).
    cand_v, cand_i = _tile_topk(lat, j * td, k=k, kpad=kpad,
                                idx_sentinel=idx_sentinel)

    @pl.when(j == 0)
    def _():
        vals_ref[...] = cand_v
        inds_ref[...] = cand_i

    @pl.when(j > 0)
    def _():
        mv, mi = _merge_topk(cand_v, cand_i, vals_ref[...], inds_ref[...],
                             k=k, kpad=kpad, idx_sentinel=idx_sentinel)
        vals_ref[...] = mv
        inds_ref[...] = mi


# ----------------------------------------------------------------------------
# Kernel 2: aux-k over dead-masked pre-activations, skipping dead-free tiles.
# grid = (batch tiles [parallel], n_dirs tiles [arbitrary])
# ----------------------------------------------------------------------------
def _auxk_kernel(tile_dead_ref, lat_ref, dead_ref, avals_ref, ainds_ref, *,
                 auxk, akpad, n_dirs):
    j = pl.program_id(1)
    td = lat_ref.shape[1]
    idx_sentinel = n_dirs + akpad

    @pl.when(j == 0)
    def _():
        avals_ref[...] = jnp.full(avals_ref.shape, _NEG, jnp.float32)
        ainds_ref[...] = jnp.full(ainds_ref.shape, idx_sentinel, jnp.int32)

    # Scalar-prefetched per-tile dead count: tiles with no dead features skip
    # the whole O(auxk * td) selection/merge.
    @pl.when(tile_dead_ref[j] > 0)
    def _():
        masked = lat_ref[...].astype(jnp.float32) * dead_ref[...]
        cand_v, cand_i = _tile_topk(masked, j * td, k=auxk, kpad=akpad,
                                    idx_sentinel=idx_sentinel)
        mv, mi = _merge_topk(cand_v, cand_i, avals_ref[...], ainds_ref[...],
                             k=auxk, kpad=akpad, idx_sentinel=idx_sentinel)
        avals_ref[...] = mv
        ainds_ref[...] = mi


# ----------------------------------------------------------------------------
# Kernel 3: decode  recons = topk_latents @ W_dec^T + pre_bias
# grid = (batch [parallel], d_model [parallel], n_dirs [arbitrary])
# ----------------------------------------------------------------------------
def _decode_kernel(lat_ref, w_dec_ref, pre_b_ref, out_ref):
    @pl.when(pl.program_id(2) == 0)
    def _():
        out_ref[...] = jnp.broadcast_to(pre_b_ref[...], out_ref.shape)

    out_ref[...] += jax.lax.dot_general(                  # contract n_dirs tile
        lat_ref[...], w_dec_ref[...], (((1,), (1,)), ((), ())),
        preferred_element_type=jnp.float32)


# ----------------------------------------------------------------------------
# Wrapper
# ----------------------------------------------------------------------------
def sae_forward(x, pre_bias, latent_bias, w_enc, w_dec, stats_last_nonzero, *,
                k, auxk, dead_steps_threshold,
                tb=256, td=512, tdm=2048, vmem_limit_bytes=None):
    """Pallas TPU implementation of SparseAutoencoder.forward.

    w_enc: [n_dirs, d_model] (encoder.weight; pass bf16 to avoid a per-call cast)
    w_dec: [d_model, n_dirs] (decoder.weight)

    Defaults tb=256 / td=512 / tdm=2048 keep both matmuls past the HBM ridge on
    v5e/v7x while the streamed W_enc tile (2 * td * d_model * 2 B) stays inside
    v7x's 64 MiB VMEM for d_model <= ~12K.  Use tb=512-1024 on v6e.  On v7x keep
    B // tb >= 2 so the "parallel" batch axis spans both TensorCores.
    Returns (recons, aux_dict, new_stats_last_nonzero [int32]).
    """
    B, d_model = x.shape
    n_dirs = w_enc.shape[0]
    assert w_enc.shape == (n_dirs, d_model)
    assert w_dec.shape == (d_model, n_dirs)

    tb = min(tb, B)
    td = min(td, n_dirs)
    tdm = min(tdm, d_model)
    assert B % tb == 0 and n_dirs % td == 0 and d_model % tdm == 0
    assert td >= k and (auxk is None or td >= auxk)

    if vmem_limit_bytes is None:
        vmem_limit_bytes = _default_vmem_limit()

    kpad = _round_up(k, 128)
    emit_latents = auxk is not None

    pre_b = pre_bias.reshape(1, d_model).astype(jnp.float32)
    lat_b = latent_bias.reshape(1, n_dirs).astype(jnp.float32)
    stats = stats_last_nonzero.astype(jnp.int32)

    # Persistent bf16 weights should be kept by the caller; cast only if needed.
    w_enc_bf16 = w_enc if w_enc.dtype == jnp.bfloat16 else w_enc.astype(jnp.bfloat16)
    w_dec_bf16 = w_dec if w_dec.dtype == jnp.bfloat16 else w_dec.astype(jnp.bfloat16)

    # Hoisted: subtract pre_bias and cast once; x is streamed as bf16.
    xc = (x.astype(jnp.float32) - pre_b).astype(jnp.bfloat16)

    # ---- kernel 1: encode + top-k -------------------------------------------
    enc_out_shape = [jax.ShapeDtypeStruct((B, kpad), jnp.float32),
                     jax.ShapeDtypeStruct((B, kpad), jnp.int32)]
    enc_out_specs = [pl.BlockSpec((tb, kpad), lambda i, j: (i, 0)),   # resident over j
                     pl.BlockSpec((tb, kpad), lambda i, j: (i, 0))]
    if emit_latents:
        enc_out_shape.append(jax.ShapeDtypeStruct((B, n_dirs), jnp.bfloat16))
        enc_out_specs.append(pl.BlockSpec((tb, td), lambda i, j: (i, j)))

    enc_bytes = int(xc.size * 2 + (B // tb) * n_dirs * d_model * 2
                    + (B * n_dirs * 2 if emit_latents else 0) + 2 * B * kpad * 4)
    enc_outs = pl.pallas_call(
        functools.partial(_encode_topk_kernel, k=k, kpad=kpad, n_dirs=n_dirs,
                          emit_latents=emit_latents),
        out_shape=tuple(enc_out_shape),
        grid=(B // tb, n_dirs // td),
        in_specs=[
            pl.BlockSpec((tb, d_model), lambda i, j: (i, 0)),   # x (bf16, resident)
            pl.BlockSpec((1, td), lambda i, j: (0, j)),          # latent_bias
            pl.BlockSpec((td, d_model), lambda i, j: (j, 0)),    # W_enc (bf16 stream)
        ],
        out_specs=tuple(enc_out_specs),
        compiler_params=pltpu.CompilerParams(
            dimension_semantics=("parallel", "arbitrary"),
            vmem_limit_bytes=vmem_limit_bytes),
        cost_estimate=pl.CostEstimate(flops=2 * B * d_model * n_dirs,
                                      transcendentals=0,
                                      bytes_accessed=enc_bytes),
    )(xc, lat_b, w_enc_bf16)

    if emit_latents:
        vals_pad, inds_pad, latents_pre = enc_outs
    else:
        (vals_pad, inds_pad), latents_pre = enc_outs, None

    vals_raw = vals_pad[:, :k]              # f32, descending
    inds = inds_pad[:, :k]                  # int32
    vals_relu = jnp.maximum(vals_raw, 0.0)

    # ---- whole-batch dead-feature statistics (tiny O(B*k) scatter-add) -------
    fired = (vals_raw > 0.001).astype(jnp.int32).reshape(-1)
    counts = jnp.zeros((n_dirs,), jnp.int32).at[inds.reshape(-1)].add(fired)
    new_stats = stats * (1 - jnp.minimum(counts, 1)) + 1

    # ---- kernel 2: aux-k over dead-masked pre-activations --------------------
    if auxk is not None:
        akpad = _round_up(auxk, 128)
        dead = new_stats > dead_steps_threshold
        dead_mask = dead.astype(jnp.float32).reshape(1, n_dirs)
        tile_dead = jnp.sum(dead.reshape(n_dirs // td, td), axis=1,
                            dtype=jnp.int32)                 # per-tile dead counts
        avals_pad, ainds_pad = pl.pallas_call(
            functools.partial(_auxk_kernel, auxk=auxk, akpad=akpad,
                              n_dirs=n_dirs),
            out_shape=(jax.ShapeDtypeStruct((B, akpad), jnp.float32),
                       jax.ShapeDtypeStruct((B, akpad), jnp.int32)),
            grid_spec=pltpu.PrefetchScalarGridSpec(
                num_scalar_prefetch=1,
                grid=(B // tb, n_dirs // td),
                in_specs=[
                    pl.BlockSpec((tb, td), lambda i, j, tdc: (i, j)),   # latents bf16
                    pl.BlockSpec((1, td), lambda i, j, tdc: (0, j)),    # dead mask
                ],
                out_specs=(
                    pl.BlockSpec((tb, akpad), lambda i, j, tdc: (i, 0)),
                    pl.BlockSpec((tb, akpad), lambda i, j, tdc: (i, 0)),
                )),
            compiler_params=pltpu.CompilerParams(
                dimension_semantics=("parallel", "arbitrary"),
                vmem_limit_bytes=vmem_limit_bytes),
        )(tile_dead, latents_pre, dead_mask)
        auxk_vals = jnp.maximum(avals_pad[:, :auxk], 0.0)
        # Sentinel indices (only when fewer than auxk dead candidates exist) are
        # clamped into range; their relu'd value is 0 so downstream use is safe.
        auxk_inds = jnp.minimum(ainds_pad[:, :auxk], n_dirs - 1)
    else:
        auxk_vals = None
        auxk_inds = None

    # ---- kernel 3: decode -----------------------------------------------------
    # Dense top-k latent matrix (what torch.sparse.mm multiplies), scattered
    # directly into bf16 (no f32 intermediate).
    # TODO(synk): replace the dense decode with a manual-DMA gather of the k
    # decoder rows per sample (2*B*d_model*k FLOPs instead of *n_dirs) for
    # small/medium batch.
    rows = jnp.arange(B, dtype=jnp.int32)[:, None]
    latents_dense = jnp.zeros((B, n_dirs), jnp.bfloat16).at[rows, inds].set(
        vals_relu.astype(jnp.bfloat16))

    dec_bytes = int((d_model // tdm) * B * n_dirs * 2
                    + (B // tb) * n_dirs * d_model * 2 + B * d_model * 4)
    recons = pl.pallas_call(
        _decode_kernel,
        out_shape=jax.ShapeDtypeStruct((B, d_model), jnp.float32),
        grid=(B // tb, d_model // tdm, n_dirs // td),
        in_specs=[
            pl.BlockSpec((tb, td), lambda i, j, t: (i, t)),     # top-k latents bf16
            pl.BlockSpec((tdm, td), lambda i, j, t: (j, t)),    # W_dec bf16 stream
            pl.BlockSpec((1, tdm), lambda i, j, t: (0, j)),     # pre_bias
        ],
        out_specs=pl.BlockSpec((tb, tdm), lambda i, j, t: (i, j)),
        compiler_params=pltpu.CompilerParams(
            dimension_semantics=("parallel", "parallel", "arbitrary"),
            vmem_limit_bytes=vmem_limit_bytes),
        cost_estimate=pl.CostEstimate(flops=2 * B * d_model * n_dirs,
                                      transcendentals=0,
                                      bytes_accessed=dec_bytes),
    )(latents_dense, w_dec_bf16, pre_b)

    aux = {
        "inds": inds.reshape(-1),          # torch returns these flattened
        "vals": vals_relu.reshape(-1),
        "auxk_inds": auxk_inds,
        "auxk_vals": auxk_vals,
    }
    if latents_pre is not None:
        aux["latents_pre"] = latents_pre   # bf16, exposed for aux losses / tests
    return recons, aux, new_stats


# ------------------------------------------------------------------------------
if __name__ == "__main__":
    # small shapes consistent with the module, big enough to exercise tiling
    B, d_model, n_dirs, k, auxk, dead_thr = 32, 128, 512, 4, 8, 2

    key = jax.random.PRNGKey(0)
    kx, ke, kp, kl = jax.random.split(key, 4)

    x = jax.random.normal(kx, (B, d_model), jnp.float32)
    w_enc = jax.random.normal(ke, (n_dirs, d_model), jnp.float32) * 0.2  # encoder.weight
    w_dec = w_enc.T                                                      # decoder.weight = enc.weight.T
    w_dec = w_dec / jnp.linalg.norm(w_dec, axis=0, keepdims=True)        # unit_norm_decoder_
    pre_bias = 0.05 * jax.random.normal(kp, (d_model,), jnp.float32)
    latent_bias = 0.05 * jax.random.normal(kl, (n_dirs,), jnp.float32)
    stats = jnp.arange(n_dirs, dtype=jnp.int32) % 5    # varied -> exercises dead mask

    # persistent bf16 weights (cast once, outside the forward)
    w_enc_bf16 = w_enc.astype(jnp.bfloat16)
    w_dec_bf16 = w_dec.astype(jnp.bfloat16)

    recons, aux, new_stats = sae_forward(
        x, pre_bias, latent_bias, w_enc_bf16, w_dec_bf16, stats,
        k=k, auxk=auxk, dead_steps_threshold=dead_thr,
        tb=16, td=256, tdm=128)
    jax.block_until_ready(recons)

    # ---- verification ---------------------------------------------------------
    xc = (x - pre_bias).astype(jnp.bfloat16)
    lat_ref = jax.lax.dot_general(
        xc, w_enc_bf16, (((1,), (1,)), ((), ())),
        preferred_element_type=jnp.float32) + latent_bias              # f32 reference

    # 1) encoder matmul (kernel stores bf16 latents)
    lat_ker = aux["latents_pre"].astype(jnp.float32)
    assert jnp.allclose(lat_ker, lat_ref, rtol=2e-2, atol=2e-2)

    # 2) top-k selection: values at the kernel-chosen indices equal the reference
    #    top-k values (robust to fp tie-order noise between XLA / Pallas matmuls).
    inds_k = aux["inds"].reshape(B, k)
    vals_k = aux["vals"].reshape(B, k)
    ref_vals, _ = jax.lax.top_k(lat_ref, k)
    sel_vals = jnp.take_along_axis(lat_ref, inds_k, axis=1)
    assert int(jnp.min(inds_k)) >= 0 and int(jnp.max(inds_k)) < n_dirs
    assert jnp.allclose(sel_vals, ref_vals, rtol=1e-3, atol=1e-3)
    assert jnp.allclose(vals_k, jnp.maximum(sel_vals, 0.0), rtol=1e-3, atol=1e-3)

    # 3) stats_last_nonzero update formula (driven by the kernel's own selection)
    counts_r = jnp.zeros((n_dirs,), jnp.int32).at[inds_k.reshape(-1)].add(
        (sel_vals.reshape(-1) > 0.001).astype(jnp.int32))
    ns_r = stats * (1 - jnp.minimum(counts_r, 1)) + 1
    assert jnp.array_equal(new_stats, ns_r)

    # 4) aux-k: exact vs lax.top_k over the same (bf16) latents * dead mask.
    #    Both n_dirs tiles contain dead features here, so no tile is skipped.
    dead_r = (ns_r > dead_thr).astype(jnp.float32)
    masked_r = lat_ker * dead_r[None, :]
    avals_r, ainds_r = jax.lax.top_k(masked_r, auxk)
    assert jnp.array_equal(aux["auxk_inds"], ainds_r)
    assert jnp.allclose(aux["auxk_vals"], jnp.maximum(avals_r, 0.0),
                        rtol=1e-6, atol=1e-6)

    # 5) decode vs XLA reference built from the kernel's own inds/vals.
    rows = jnp.arange(B)[:, None]
    lat_dense_r = jnp.zeros((B, n_dirs), jnp.bfloat16).at[rows, inds_k].set(
        vals_k.astype(jnp.bfloat16))
    recons_r = jax.lax.dot_general(
        lat_dense_r, w_dec_bf16, (((1,), (1,)), ((), ())),
        preferred_element_type=jnp.float32) + pre_bias
    assert jnp.allclose(recons, recons_r, rtol=1e-3, atol=1e-3)

    print("KERNEL_OK")
</pallas_src>

<mosaic_0001>
module attributes {stable_mosaic.version = 11 : i64} {
  func.func @_encode_topk_kernel(%arg0: i32, %arg1: i32, %arg2: memref<16x128xbf16, #tpu.memory_space<vmem>>, %arg3: memref<1x256xf32, #tpu.memory_space<vmem>>, %arg4: memref<256x128xbf16, #tpu.memory_space<vmem>>, %arg5: memref<16x128xf32, #tpu.memory_space<vmem>>, %arg6: memref<16x128xi32, #tpu.memory_space<vmem>>, %arg7: memref<16x256xbf16, #tpu.memory_space<vmem>>) attributes {dimension_semantics = [#tpu.dimension_semantics<parallel>, #tpu.dimension_semantics<arbitrary>], iteration_bounds = array<i64: 2, 2>, scalar_prefetch = 0 : i64, scratch_operands = 0 : i64, tpu.core_type = #tpu.core_type<tc>, window_params = [{transform_indices = @transform_0, window_bounds = array<i64: 16, 128>}, {transform_indices = @transform_1, window_bounds = array<i64: 1, 256>}, {transform_indices = @transform_2, window_bounds = array<i64: 256, 128>}, {transform_indices = @transform_3, window_bounds = array<i64: 16, 128>}, {transform_indices = @transform_4, window_bounds = array<i64: 16, 128>}, {transform_indices = @transform_5, window_bounds = array<i64: 16, 256>}]} {
    %c0 = arith.constant 0 : index
    %c0_0 = arith.constant 0 : index
    %0 = vector.load %arg2[%c0, %c0_0] : memref<16x128xbf16, #tpu.memory_space<vmem>>, vector<16x128xbf16>
    %c0_1 = arith.constant 0 : index
    %c0_2 = arith.constant 0 : index
    %1 = vector.load %arg4[%c0_1, %c0_2] : memref<256x128xbf16, #tpu.memory_space<vmem>>, vector<256x128xbf16>
    %cst = arith.constant dense<0.000000e+00> : vector<16x256xf32>
    %2 = tpu.matmul %0, %1, %cst {dimension_numbers = #tpu.dot_dimension_numbers<[1], [1], [0], [0], [0, 0, 1, 0], [], []>} : vector<16x128xbf16>, vector<256x128xbf16>, vector<16x256xf32> -> vector<16x256xf32>
    %c0_3 = arith.constant 0 : index
    %c0_4 = arith.constant 0 : index
    %3 = vector.load %arg3[%c0_3, %c0_4] : memref<1x256xf32, #tpu.memory_space<vmem>>, vector<1x256xf32>
    %4 = vector.broadcast %3 : vector<1x256xf32> to vector<16x256xf32>
    %5 = arith.addf %2, %4 : vector<16x256xf32>
    %6 = arith.truncf %5 : vector<16x256xf32> to vector<16x256xbf16>
    %c0_5 = arith.constant 0 : index
    %c0_6 = arith.constant 0 : index
    %7 = vector.load %arg7[%c0_5, %c0_6] : memref<16x256xbf16, #tpu.memory_space<vmem>>, vector<16x256xbf16>
    tpu.vector_store %arg7[%c0_5, %c0_6], %6 {strides = array<i32>} : memref<16x256xbf16, #tpu.memory_space<vmem>>, vector<16x256xbf16>,
    %c256_i32 = arith.constant 256 : i32
    %8 = arith.muli %arg1, %c256_i32 : i32
    %9 = tpu.iota {dimensions = array<i32: 1>} : vector<16x256xi32>
    %10 = vector.broadcast %8 : i32 to vector<16x256xi32>
    %11 = arith.addi %9, %10 : vector<16x256xi32>
    %cst_7 = arith.constant dense<0xFF800000> : vector<16xf32>
    %12 = vector.multi_reduction <maximumf>, %5, %cst_7 [1] : vector<16x256xf32> to vector<16xf32>
    %13 = vector.shape_cast %12 : vector<16xf32> to vector<16x1xf32>
    %14 = vector.broadcast %13 : vector<16x1xf32> to vector<16x256xf32>
    %15 = arith.cmpf oeq, %5, %14 : vector<16x256xf32>
    %c640_i32 = arith.constant 640 : i32
    %16 = vector.broadcast %c640_i32 : i32 to vector<16x256xi32>
    %17 = arith.select %15, %11, %16 : vector<16x256xi1>, vector<16x256xi32>
    %cst_8 = arith.constant dense<2147483647> : vector<16xi32>
    %18 = vector.multi_reduction <minsi>, %17, %cst_8 [1] : vector<16x256xi32> to vector<16xi32>
    %19 = vector.shape_cast %18 : vector<16xi32> to vector<16x1xi32>
    %20 = vector.broadcast %13 : vector<16x1xf32> to vector<16x256xf32>
    %21 = arith.cmpf olt, %5, %20 : vector<16x256xf32>
    %22 = vector.broadcast %13 : vector<16x1xf32> to vector<16x256xf32>
    %23 = arith.cmpf oeq, %5, %22 : vector<16x256xf32>
    %24 = vector.broadcast %19 : vector<16x1xi32> to vector<16x256xi32>
    %25 = arith.cmpi sgt, %11, %24 : vector<16x256xi32>
    %26 = arith.andi %23, %25 : vector<16x256xi1>
    %27 = arith.ori %21, %26 : vector<16x256xi1>
    %cst_9 = arith.constant -3.40282347E+38 : f32
    %28 = vector.broadcast %cst_9 : f32 to vector<16x256xf32>
    %29 = arith.select %27, %5, %28 : vector<16x256xi1>, vector<16x256xf32>
    %cst_10 = arith.constant dense<0xFF800000> : vector<16xf32>
    %30 = vector.multi_reduction <maximumf>, %29, %cst_10 [1] : vector<16x256xf32> to vector<16xf32>
    %31 = vector.shape_cast %30 : vector<16xf32> to vector<16x1xf32>
    %32 = vector.broadcast %31 : vector<16x1xf32> to vector<16x256xf32>
    %33 = arith.cmpf oeq, %5, %32 : vector<16x256xf32>
    %34 = arith.andi %27, %33 : vector<16x256xi1>
    %c640_i32_11 = arith.constant 640 : i32
    %35 = vector.broadcast %c640_i32_11 : i32 to vector<16x256xi32>
    %36 = arith.select %34, %11, %35 : vector<16x256xi1>, vector<16x256xi32>
    %cst_12 = arith.constant dense<2147483647> : vector<16xi32>
    %37 = vector.multi_reduction <minsi>, %36, %cst_12 [1] : vector<16x256xi32> to vector<16xi32>
    %38 = vector.shape_cast %37 : vector<16xi32> to vector<16x1xi32>
    %39 = vector.broadcast %31 : vector<16x1xf32> to vector<16x256xf32>
    %40 = arith.cmpf olt, %5, %39 : vector<16x256xf32>
    %41 = vector.broadcast %31 : vector<16x1xf32> to vector<16x256xf32>
    %42 = arith.cmpf oeq, %5, %41 : vector<16x256xf32>
    %43 = vector.broadcast %38 : vector<16x1xi32> to vector<16x256xi32>
    %44 = arith.cmpi sgt, %11, %43 : vector<16x256xi32>
    %45 = arith.andi %42, %44 : vector<16x256xi1>
    %46 = arith.ori %40, %45 : vector<16x256xi1>
    %cst_13 = arith.constant -3.40282347E+38 : f32
    %47 = vector.broadcast %cst_13 : f32 to vector<16x256xf32>
    %48 = arith.select %46, %5, %47 : vector<16x256xi1>, vector<16x256xf32>
    %cst_14 = arith.constant dense<0xFF800000> : vector<16xf32>
    %49 = vector.multi_reduction <maximumf>, %48, %cst_14 [1] : vector<16x256xf32> to vector<16xf32>
    %50 = vector.shape_cast %49 : vector<16xf32> to vector<16x1xf32>
    %51 = vector.broadcast %50 : vector<16x1xf32> to vector<16x256xf32>
    %52 = arith.cmpf oeq, %5, %51 : vector<16x256xf32>
    %53 = arith.andi %46, %52 : vector<16x256xi1>
    %c640_i32_15 = arith.constant 640 : i32
    %54 = vector.broadcast %c640_i32_15 : i32 to vector<16x256xi32>
    %55 = arith.select %53, %11, %54 : vector<16x256xi1>, vector<16x256xi32>
    %cst_16 = arith.constant dense<2147483647> : vector<16xi32>
    %56 = vector.multi_reduction <minsi>, %55, %cst_16 [1] : vector<16x256xi32> to vector<16xi32>
    %57 = vector.shape_cast %56 : vector<16xi32> to vector<16x1xi32>
    %58 = vector.broadcast %50 : vector<16x1xf32> to vector<16x256xf32>
    %59 = arith.cmpf olt, %5, %58 : vector<16x256xf32>
    %60 = vector.broadcast %50 : vector<16x1xf32> to vector<16x256xf32>
    %61 = arith.cmpf oeq, %5, %60 : vector<16x256xf32>
    %62 = vector.broadcast %57 : vector<16x1xi32> to vector<16x256xi32>
    %63 = arith.cmpi sgt, %11, %62 : vector<16x256xi32>
    %64 = arith.andi %61, %63 : vector<16x256xi1>
    %65 = arith.ori %59, %64 : vector<16x256xi1>
    %cst_17 = arith.constant -3.40282347E+38 : f32
    %66 = vector.broadcast %cst_17 : f32 to vector<16x256xf32>
    %67 = arith.select %65, %5, %66 : vector<16x256xi1>, vector<16x256xf32>
    %cst_18 = arith.constant dense<0xFF800000> : vector<16xf32>
    %68 = vector.multi_reduction <maximumf>, %67, %cst_18 [1] : vector<16x256xf32> to vector<16xf32>
    %69 = vector.shape_cast %68 : vector<16xf32> to vector<16x1xf32>
    %70 = vector.broadcast %69 : vector<16x1xf32> to vector<16x256xf32>
    %71 = arith.cmpf oeq, %5, %70 : vector<16x256xf32>
    %72 = arith.andi %65, %71 : vector<16x256xi1>
    %c640_i32_19 = arith.constant 640 : i32
    %73 = vector.broadcast %c640_i32_19 : i32 to vector<16x256xi32>
    %74 = arith.select %72, %11, %73 : vector<16x256xi1>, vector<16x256xi32>
    %cst_20 = arith.constant dense<2147483647> : vector<16xi32>
    %75 = vector.multi_reduction <minsi>, %74, %cst_20 [1] : vector<16x256xi32> to vector<16xi32>
    %76 = vector.shape_cast %75 : vector<16xi32> to vector<16x1xi32>
    %cst_21 = arith.constant -3.40282347E+38 : f32
    %77 = vector.broadcast %cst_21 : f32 to vector<16x124xf32>
    %c640_i32_22 = arith.constant 640 : i32
    %78 = vector.broadcast %c640_i32_22 : i32 to vector<16x124xi32>
    %79 = tpu.concatenate %13, %31, %50, %69, %77 in 1 : vector<16x1xf32>, vector<16x1xf32>, vector<16x1xf32>, vector<16x1xf32>, vector<16x124xf32> -> vector<16x128xf32>
    %80 = tpu.concatenate %19, %38, %57, %76, %78 in 1 : vector<16x1xi32>, vector<16x1xi32>, vector<16x1xi32>, vector<16x1xi32>, vector<16x124xi32> -> vector<16x128xi32>
    %c0_i32 = arith.constant 0 : i32
    %81 = arith.cmpi eq, %arg1, %c0_i32 : i32
    %82 = arith.extui %81 : i1 to i32
    %c0_i32_23 = arith.constant 0 : i32
    %83 = arith.cmpi ne, %82, %c0_i32_23 : i32
    scf.if %83 {
      %c0_26 = arith.constant 0 : index
      %c0_27 = arith.constant 0 : index
      %87 = vector.load %arg5[%c0_26, %c0_27] : memref<16x128xf32, #tpu.memory_space<vmem>>, vector<16x128xf32>
      tpu.vector_store %arg5[%c0_26, %c0_27], %79 {strides = array<i32>} : memref<16x128xf32, #tpu.memory_space<vmem>>, vector<16x128xf32>,
      %c0_28 = arith.constant 0 : index
      %c0_29 = arith.constant 0 : index
      %88 = vector.load %arg6[%c0_28, %c0_29] : memref<16x128xi32, #tpu.memory_space<vmem>>, vector<16x128xi32>
      tpu.vector_store %arg6[%c0_28, %c0_29], %80 {strides = array<i32>} : memref<16x128xi32, #tpu.memory_space<vmem>>, vector<16x128xi32>,
    } else {
    }
    %c0_i32_24 = arith.constant 0 : i32
    %84 = arith.cmpi sgt, %arg1, %c0_i32_24 : i32
    %85 = arith.extui %84 : i1 to i32
    %c0_i32_25 = arith.constant 0 : i32
    %86 = arith.cmpi ne, %85, %c0_i32_25 : i32
    scf.if %86 {
      %c0_26 = arith.constant 0 : index
      %c0_27 = arith.constant 0 : index
      %87 = vector.load %arg5[%c0_26, %c0_27] : memref<16x128xf32, #tpu.memory_space<vmem>>, vector<16x128xf32>
      %c0_28 = arith.constant 0 : index
      %c0_29 = arith.constant 0 : index
      %88 = vector.load %arg6[%c0_28, %c0_29] : memref<16x128xi32, #tpu.memory_space<vmem>>, vector<16x128xi32>
      %89 = tpu.concatenate %79, %87 in 1 : vector<16x128xf32>, vector<16x128xf32> -> vector<16x256xf32>
      %90 = tpu.concatenate %80, %88 in 1 : vector<16x128xi32>, vector<16x128xi32> -> vector<16x256xi32>
      %cst_30 = arith.constant dense<0xFF800000> : vector<16xf32>
      %91 = vector.multi_reduction <maximumf>, %89, %cst_30 [1] : vector<16x256xf32> to vector<16xf32>
      %92 = vector.shape_cast %91 : vector<16xf32> to vector<16x1xf32>
      %93 = vector.broadcast %92 : vector<16x1xf32> to vector<16x256xf32>
      %94 = arith.cmpf oeq, %89, %93 : vector<16x256xf32>
      %c640_i32_31 = arith.constant 640 : i32
      %95 = vector.broadcast %c640_i32_31 : i32 to vector<16x256xi32>
      %96 = arith.select %94, %90, %95 : vector<16x256xi1>, vector<16x256xi32>
      %cst_32 = arith.constant dense<2147483647> : vector<16xi32>
      %97 = vector.multi_reduction <minsi>, %96, %cst_32 [1] : vector<16x256xi32> to vector<16xi32>
      %98 = vector.shape_cast %97 : vector<16xi32> to vector<16x1xi32>
      %99 = vector.broadcast %92 : vector<16x1xf32> to vector<16x256xf32>
      %100 = arith.cmpf olt, %89, %99 : vector<16x256xf32>
      %101 = vector.broadcast %92 : vector<16x1xf32> to vector<16x256xf32>
      %102 = arith.cmpf oeq, %89, %101 : vector<16x256xf32>
      %103 = vector.broadcast %98 : vector<16x1xi32> to vector<16x256xi32>
      %104 = arith.cmpi sgt, %90, %103 : vector<16x256xi32>
      %105 = arith.andi %102, %104 : vector<16x256xi1>
      %106 = arith.ori %100, %105 : vector<16x256xi1>
      %cst_33 = arith.constant -3.40282347E+38 : f32
      %107 = vector.broadcast %cst_33 : f32 to vector<16x256xf32>
      %108 = arith.select %106, %89, %107 : vector<16x256xi1>, vector<16x256xf32>
      %cst_34 = arith.constant dense<0xFF800000> : vector<16xf32>
      %109 = vector.multi_reduction <maximumf>, %108, %cst_34 [1] : vector<16x256xf32> to vector<16xf32>
      %110 = vector.shape_cast %109 : vector<16xf32> to vector<16x1xf32>
      %111 = vector.broadcast %110 : vector<16x1xf32> to vector<16x256xf32>
      %112 = arith.cmpf oeq, %89, %111 : vector<16x256xf32>
      %113 = arith.andi %106, %112 : vector<16x256xi1>
      %c640_i32_35 = arith.constant 640 : i32
      %114 = vector.broadcast %c640_i32_35 : i32 to vector<16x256xi32>
      %115 = arith.select %113, %90, %114 : vector<16x256xi1>, vector<16x256xi32>
      %cst_36 = arith.constant dense<2147483647> : vector<16xi32>
      %116 = vector.multi_reduction <minsi>, %115, %cst_36 [1] : vector<16x256xi32> to vector<16xi32>
      %117 = vector.shape_cast %116 : vector<16xi32> to vector<16x1xi32>
      %118 = vector.broadcast %110 : vector<16x1xf32> to vector<16x256xf32>
      %119 = arith.cmpf olt, %89, %118 : vector<16x256xf32>
      %120 = vector.broadcast %110 : vector<16x1xf32> to vector<16x256xf32>
      %121 = arith.cmpf oeq, %89, %120 : vector<16x256xf32>
      %122 = vector.broadcast %117 : vector<16x1xi32> to vector<16x256xi32>
      %123 = arith.cmpi sgt, %90, %122 : vector<16x256xi32>
      %124 = arith.andi %121, %123 : vector<16x256xi1>
      %125 = arith.ori %119, %124 : vector<16x256xi1>
      %cst_37 = arith.constant -3.40282347E+38 : f32
      %126 = vector.broadcast %cst_37 : f32 to vector<16x256xf32>
      %127 = arith.select %125, %89, %126 : vector<16x256xi1>, vector<16x256xf32>
      %cst_38 = arith.constant dense<0xFF800000> : vector<16xf32>
      %128 = vector.multi_reduction <maximumf>, %127, %cst_38 [1] : vector<16x256xf32> to vector<16xf32>
      %129 = vector.shape_cast %128 : vector<16xf32> to vector<16x1xf32>
      %130 = vector.broadcast %129 : vector<16x1xf32> to vector<16x256xf32>
      %131 = arith.cmpf oeq, %89, %130 : vector<16x256xf32>
      %132 = arith.andi %125, %131 : vector<16x256xi1>
      %c640_i32_39 = arith.constant 640 : i32
      %133 = vector.broadcast %c640_i32_39 : i32 to vector<16x256xi32>
      %134 = arith.select %132, %90, %133 : vector<16x256xi1>, vector<16x256xi32>
      %cst_40 = arith.constant dense<2147483647> : vector<16xi32>
      %135 = vector.multi_reduction <minsi>, %134, %cst_40 [1] : vector<16x256xi32> to vector<16xi32>
      %136 = vector.shape_cast %135 : vector<16xi32> to vector<16x1xi32>
      %137 = vector.broadcast %129 : vector<16x1xf32> to vector<16x256xf32>
      %138 = arith.cmpf olt, %89, %137 : vector<16x256xf32>
      %139 = vector.broadcast %129 : vector<16x1xf32> to vector<16x256xf32>
      %140 = arith.cmpf oeq, %89, %139 : vector<16x256xf32>
      %141 = vector.broadcast %136 : vector<16x1xi32> to vector<16x256xi32>
      %142 = arith.cmpi sgt, %90, %141 : vector<16x256xi32>
      %143 = arith.andi %140, %142 : vector<16x256xi1>
      %144 = arith.ori %138, %143 : vector<16x256xi1>
      %cst_41 = arith.constant -3.40282347E+38 : f32
      %145 = vector.broadcast %cst_41 : f32 to vector<16x256xf32>
      %146 = arith.select %144, %89, %145 : vector<16x256xi1>, vector<16x256xf32>
      %cst_42 = arith.constant dense<0xFF800000> : vector<16xf32>
      %147 = vector.multi_reduction <maximumf>, %146, %cst_42 [1] : vector<16x256xf32> to vector<16xf32>
      %148 = vector.shape_cast %147 : vector<16xf32> to vector<16x1xf32>
      %149 = vector.broadcast %148 : vector<16x1xf32> to vector<16x256xf32>
      %150 = arith.cmpf oeq, %89, %149 : vector<16x256xf32>
      %151 = arith.andi %144, %150 : vector<16x256xi1>
      %c640_i32_43 = arith.constant 640 : i32
      %152 = vector.broadcast %c640_i32_43 : i32 to vector<16x256xi32>
      %153 = arith.select %151, %90, %152 : vector<16x256xi1>, vector<16x256xi32>
      %cst_44 = arith.constant dense<2147483647> : vector<16xi32>
      %154 = vector.multi_reduction <minsi>, %153, %cst_44 [1] : vector<16x256xi32> to vector<16xi32>
      %155 = vector.shape_cast %154 : vector<16xi32> to vector<16x1xi32>
      %cst_45 = arith.constant -3.40282347E+38 : f32
      %156 = vector.broadcast %cst_45 : f32 to vector<16x124xf32>
      %c640_i32_46 = arith.constant 640 : i32
      %157 = vector.broadcast %c640_i32_46 : i32 to vector<16x124xi32>
      %158 = tpu.concatenate %92, %110, %129, %148, %156 in 1 : vector<16x1xf32>, vector<16x1xf32>, vector<16x1xf32>, vector<16x1xf32>, vector<16x124xf32> -> vector<16x128xf32>
      %159 = tpu.concatenate %98, %117, %136, %155, %157 in 1 : vector<16x1xi32>, vector<16x1xi32>, vector<16x1xi32>, vector<16x1xi32>, vector<16x124xi32> -> vector<16x128xi32>
      %c0_47 = arith.constant 0 : index
      %c0_48 = arith.constant 0 : index
      %160 = vector.load %arg5[%c0_47, %c0_48] : memref<16x128xf32, #tpu.memory_space<vmem>>, vector<16x128xf32>
      tpu.vector_store %arg5[%c0_47, %c0_48], %158 {strides = array<i32>} : memref<16x128xf32, #tpu.memory_space<vmem>>, vector<16x128xf32>,
      %c0_49 = arith.constant 0 : index
      %c0_50 = arith.constant 0 : index
      %161 = vector.load %arg6[%c0_49, %c0_50] : memref<16x128xi32, #tpu.memory_space<vmem>>, vector<16x128xi32>
      tpu.vector_store %arg6[%c0_49, %c0_50], %159 {strides = array<i32>} : memref<16x128xi32, #tpu.memory_space<vmem>>, vector<16x128xi32>,
    } else {
    }
    return
  }
  func.func @transform_0(%arg0: i32, %arg1: i32) -> (i32, i32) {
    %c0_i32 = arith.constant 0 : i32
    %c0_i32_0 = arith.constant 0 : i32
    return %arg0, %c0_i32 : i32, i32
  }
  func.func @transform_1(%arg0: i32, %arg1: i32) -> (i32, i32) {
    %c0_i32 = arith.constant 0 : i32
    %c0_i32_0 = arith.constant 0 : i32
    return %c0_i32, %arg1 : i32, i32
  }
  func.func @transform_2(%arg0: i32, %arg1: i32) -> (i32, i32) {
    %c0_i32 = arith.constant 0 : i32
    %c0_i32_0 = arith.constant 0 : i32
    return %arg1, %c0_i32 : i32, i32
  }
  func.func @transform_3(%arg0: i32, %arg1: i32) -> (i32, i32) {
    %c0_i32 = arith.constant 0 : i32
    %c0_i32_0 = arith.constant 0 : i32
    return %arg0, %c0_i32 : i32, i32
  }
  func.func @transform_4(%arg0: i32, %arg1: i32) -> (i32, i32) {
    %c0_i32 = arith.constant 0 : i32
    %c0_i32_0 = arith.constant 0 : i32
    return %arg0, %c0_i32 : i32, i32
  }
  func.func @transform_5(%arg0: i32, %arg1: i32) -> (i32, i32) {
    %c0_i32 = arith.constant 0 : i32
    return %arg0, %arg1 : i32, i32
  }
}

</mosaic_0001>

<bundles_post_ra>
// kernel: tpu_custom_call.1
= control target key start
LH: loop header
LB: loop body
LE: loop exit
PB: predicated region body
PF: predicated region fallthrough
CT: control target
= control target key end

     0   :  { %s3211_s0 = inlined_call_operand.hbm [shape: bf16[32,128], index: 0, kind: input, shape index: {}]   ;;  %s3212_s1 = inlined_call_operand.hbm [shape: f32[1,512], index: 1, kind: input, shape index: {}]   ;;  %s3213_s2 = inlined_call_operand.hbm [shape: bf16[512,128], index: 2, kind: input, shape index: {}]   ;;  %s3214_s3 = inlined_call_operand.hbm [shape: f32[32,128], index: 3, kind: output, shape index: {0}]   ;;  %s3215_s4 = inlined_call_operand.hbm [shape: s32[32,128], index: 4, kind: output, shape index: {1}]   ;;  %s3216_s5 = inlined_call_operand.hbm [shape: bf16[32,512], index: 5, kind: output, shape index: {2}]  }
   0x1   :  { %3235 = sst [smem:[#allocation30_spill]] %s3212_s1 }
   0x2   :  { %3236 = sst [smem:[#allocation31_spill]] %s3214_s3 }
   0x3   :  { %3237 = sst [smem:[#allocation32_spill]] %s3216_s5 }
   0x4   :  { %11 = vsyncpa [#allocation3], 0 }
   0x5   :  { %13 = vsyncpa [#allocation3 + $0x1], 0 }
   0x6   :  { %14 = vsyncpa [#allocation6], 0 }
   0x7   :  { %16 = vsyncpa [#allocation6 + $0x1], 0 }
   0x8   :  { %17 = vsyncpa [#allocation4], 0 }
   0x9   :  { %19 = vsyncpa [#allocation4 + $0x1], 0 }
   0xa   :  { %20 = vsyncpa [#allocation10], 0 }
   0xb   :  { %22 = vsyncpa [#allocation10 + $0x1], 0  ;;  %s1984_s18 = smov 0   ;;  %s1986_s19 = smov 0  }
   0xc   :  { %s1988_s20 = smov 0   ;;  %s1990_s21 = smov 0  }
   0xd   :  { %s1992_s22 = smov 0   ;;  %s1994_s23 = smov 0  }
   0xe   :  { %s1996_s24 = smov 0   ;;  %s1998_s25 = smov 0  }
   0xf   :  { %s2000_s26 = smov 0   ;;  %s2002_s27 = smov 0  }
  0x10   :  { %s2004_s28 = smov 0   ;;  %s2006_s29 = smov 0  }
  0x11   :  { %s2008_s30 = smov 0   ;;  %s2010_s6 = smov 0  }
  0x12 LB: > { %3238 = sst [smem:[#allocation17_spill]] %s1897_s20  ;;  %s2055_s7 = sadd.s32 4294967295, %s1941_s6   ;;  %s1941_s6 = sphi %s2010_s6, %s28_s6   ;;  %s1937_s30 = sphi %s2008_s30, %s3339_s30   ;;  %s1933_s29 = sphi %s2006_s29, %s3347_s29   ;;  %s1929_s28 = sphi %s2004_s28, %s3337_s28   ;;  %s1925_s27 = sphi %s2002_s27, %s3346_s27   ;;  %s1921_s26 = sphi %s2000_s26, %s3336_s26   ;;  %s1917_s25 = sphi %s1998_s25, %s3345_s25   ;;  %s1913_s24 = sphi %s1996_s24, %s3344_s24   ;;  %s1909_s23 = sphi %s1994_s23, %s3334_s23   ;;  %s1905_s22 = sphi %s1992_s22, %s3343_s22   ;;  %s1901_s21 = sphi %s1990_s21, %s3342_s21   ;;  %s1897_s20 = sphi %s1988_s20, %s3332_s20   ;;  %s1893_s19 = sphi %s1986_s19, %s3341_s19   ;;  %s1889_s18 = sphi %s1984_s18, %s3340_s18  }
  0x13   : > { %3239 = sst [smem:[#allocation18_spill]] %s1909_s23  ;;  %s37_s9 = sadd.s32 1, %s1933_s29 }
  0x14   : > { %3240 = sst [smem:[#allocation19_spill]] %s1913_s24  ;;  %s40_s10 = sadd.s32 1, %s1937_s30 }
  0x15   : > { %3241 = sst [smem:[#allocation20_spill]] %s1921_s26  ;;  %p38_p0 = scmp.ge.s32.totalorder %s37_s9, 2 }
  0x16   : > { %3242 = sst [smem:[#allocation21_spill]] %s1937_s30  ;;  %s47_s11 = sadd.s32 1, %s1921_s26 }
  0x17   : > { %p54_p1 = scmp.ne.s32.totalorder %s1921_s26, %s1917_s25  ;;  %p55_p2 = scmp.eq.s32.totalorder %s1941_s6, 0 }
  0x18   : > { %s3349_s9 = smov (%p38_p0, %s37_s9), 0  ;;  %s3351_s10 = smov (!%p38_p0, %s40_s10), %s1937_s30 }
  0x19   : > { %3243 = sst [smem:[#allocation22_spill]] %s3349_s9  ;;  %p2072_p3 = por %p55_p2, %p54_p1 }
  0x1a   : > { %p60_p4 = scmp.ne.s32.totalorder %s1917_s25, %s1913_s24  ;;  %p42_p5 = scmp.ge.s32.totalorder %s3351_s10, 2 }
  0x1b   : > { %p61_p6 = scmp.eq.s32.totalorder %s2055_s7, 0  ;;  %s70_s13 = ssub.s32 %s1933_s29, %s3349_s9 }
  0x1c   : > { %s73_s14 = sadd.s32 1, %s1909_s23  ;;  %s3353_s10 = smov (%p42_p5, %s3351_s10), 0 }
  0x1d   : > { %3245 = sst [smem:[#allocation23_spill]] %s3353_s10  ;;  %p2089_p7 = por %p61_p6, %p60_p4 }
  0x1e   : > { %p71_p8 = scmp.eq.s32.totalorder %s70_s13, 0  ;;  %s44_s16 = ssub.s32 %s1937_s30, %s3353_s10 }
  0x1f   : > { %s3246_s15 = scalar_select %p2089_p7, 1, 0 }
  0x20   : > { %p80_p9 = scmp.ne.s32.totalorder %s1909_s23, %s1905_s22  ;;  %p45_p10 = scmp.eq.s32.totalorder %s44_s16, 0 }
  0x21   : > { %p86_p11 = scmp.ne.s32.totalorder %s1905_s22, %s1901_s21  ;;  %p136_p0 = scmp.eq.s32.totalorder %s2055_s7, 3 }
  0x22   : > { %s2100_s17 = scalar_select %p71_p8, %s1909_s23, %s73_s14  }
  0x23   : > { %s2103_s8 = scalar_select %p45_p10, %s1921_s26, %s47_s11  }
  0x24   : > { %3247 = sst [smem:[#allocation24_spill]] %s2100_s17  ;;  %p2107_p12 = por %p80_p9, %p55_p2 }
  0x25   : > { %3248 = sst [smem:[#allocation25_spill]] %s2103_s8  ;;  %p2113_p13 = por %p86_p11, %p61_p6 }
  0x26   : > { %s3251_s21 = sadd.s32 4294967294, %s1941_s6   ;;  %s176_s14 = sor.u32 %s70_s13, %s44_s16 }
  0x27   : > { %s3250_s10 = scalar_select %p2113_p13, 1, 0 }
  0x28   : > { %p142_p5 = scmp.eq.s32.totalorder %s3251_s21, 3  ;;  %s179_s11 = sadd.s32 1, %s1897_s20 }
  0x29   : > { %p2124_p8 = por %p136_p0, %p54_p1  ;;  %p177_p6 = scmp.eq.s32.totalorder %s176_s14, 0 }
  0x2a   : > { %p2131_p2 = por %p142_p5, %p60_p4  ;;  %p189_p9 = scmp.ne.s32.totalorder %s1897_s20, %s1893_s19 }
  0x2b   : > { %s3252_s8 = scalar_select %p2124_p8, 1, 0 }
  0x2c   : > { %s3253_s17 = scalar_select %p2131_p2, 1, 0 }
  0x2d   : > { %p195_p10 = scmp.ne.s32.totalorder %s1893_s19, %s1889_s18  ;;  %p2142_p11 = por %p189_p9, %p136_p0 }
  0x2e   : > { %3254 = sst [smem:[#allocation26_spill]] %s3253_s17  ;;  %p1501_p1 = scmp.lt.s32.totalorder %s1941_s6, 4 }
  0x2f   : > { %s2140_s5 = scalar_select %p177_p6, %s1897_s20, %s179_s11  }
  0x30   : > { %s3256_s21 = scalar_select %p2142_p11, 1, 0 }
  0x31   : > { %3255 = sst [smem:[#allocation27_spill]] %s2140_s5  ;;  %p2146_p13 = por %p195_p10, %p142_p5 }
  0x32   : > { %3257 = sst [smem:[#allocation28_spill]] %s3256_s21  ;;  %s237_s16 = sand.u32 1, %s1941_s6  }
  0x33   : > { %s3258_s13 = scalar_select %p2146_p13, 1, 0 }
  0x34   : > { %s239_s24 = sand.u32 1, %s1909_s23   ;;  %p2155_p4 = pnand %p1501_p1, %p2072_p3 }
  0x35   : > { %3259 = sst [smem:[#allocation29_spill]] %s3258_s13  ;;  %s1395_s14 = sshll.u32 %s239_s24, 1 }
  0x36   : > { %s1444_s18 = sshll.u32 %s1933_s29, 5  ;;  %s3261_s1 = sld [smem:[#allocation30_spill]] }
  0x37   : > { %s241_s13 = scalar_lea.vmem [#allocation5], %s1395_s14  ;;  %p2167_p0 = pnand %p1501_p1, %p2107_p12 }
  0x38   : > { %s249_s21 = sshll.u32 %s241_s13, 4  ;;  %s2173_s23 = sshll.u32 %s239_s24, 7  ;;  %s2171_s21 = int_to_ptr.vmem [resolvable:$true] %s249_s21 }
  0x39   : > { %s2175_s5 = scalar_lea.sflag [#allocation6], %s237_s16  ;;  %p3234_p5 = pneg %p2167_p0 }
  0x3c   : > { %s2163_s20 = scalar_lea.hbm %s3261_s1, %s1444_s18  ;;  %s1642_s14 = scalar_lea.hbm %s3261_s1, 64 }
  0x3d   : > { %s1637_s18 = scalar_lea.hbm %s2163_s20, 32  ;;  %p1643_p12 = scmp.lt.u32.totalorder %s2163_s20, %s3261_s1 }
  0x3e   : > { %p1638_p3 = scmp.ne.s32.totalorder %s2163_s20, %s1637_s18  ;;  %p1644_p10 = scmp.lt.u32.totalorder %s1642_s14, %s1637_s18 }
  0x3f   : > { %p1646_p13 = scmp.lt.u32.totalorder %s1637_s18, %s2163_s20 }
  0x40   : > { %p1640_p6 = pnand %p3234_p5, %p1638_p3  ;;  %p1645_p1 = por %p1644_p10, %p1643_p12 }
  0x42   : > { %p1641_p9 = pneg %p1640_p6  ;;  %p1647_p2 = por %p1646_p13, %p1645_p1 }
  0x44   : > { %p1648_p11 = pnand %p1647_p2, %p1641_p9 }
  0x46   : > { %1651 = shalt.err (!%p1648_p11)
}
  0x47   : > { %s1652_s24 = scalar_lea.vmem %s2171_s21, 32  ;;  %s1943_s16 = smov [#allocation5]  }
  0x48   : > { %p1653_p3 = scmp.ne.s32.totalorder %s2171_s21, %s1652_s24  ;;  %s1657_s9 = sshll.u32 %s1943_s16, 4  ;;  %s1658_s9 = int_to_ptr.vmem [resolvable:$false] %s1657_s9 }
  0x49   : > { %s1659_s3 = scalar_lea.vmem %s1658_s9, 64  ;;  %p1660_p7 = scmp.lt.s32.totalorder %s2171_s21, %s1658_s9 }
  0x4a   : > { %p1655_p6 = pnand %p1653_p3, %p3234_p5  ;;  %p1661_p12 = scmp.lt.s32.totalorder %s1659_s3, %s1652_s24 }
  0x4c   : > { %p1656_p8 = pneg %p1655_p6  ;;  %p1662_p10 = por %p1661_p12, %p1660_p7 }
  0x4e   : > { %p1663_p13 = pnand %p1662_p10, %p1656_p8 }
  0x50   : > { %1666 = shalt.err (!%p1663_p13)
}
  0x51   : > { %1487 = dma.hbm_to_vmem [thread:$0]  (!%p2167_p0), %s2163_s20, 32, %s2171_s21, %s2175_s5  }
  0x52   : > { %s260_s13 = scalar_lea.vmem [#allocation7], %s2173_s23  ;;  %p1401_p7 = scmp.ge.s32.totalorder %s1941_s6, 1 }
  0x53   : > { %s267_s14 = sshll.u32 %s260_s13, 4  ;;  %p275_p8 = scmp.lt.s32.totalorder %s1941_s6, 5  ;;  %s2205_s14 = int_to_ptr.vmem [resolvable:$true] %s267_s14 }
  0x54   : > { %s216_s24 = sand.u32 1, %s1921_s26   ;;  %s1443_s16 = sshll.u32 %s1937_s30, 7 }
  0x55   : > { %p2209_p2 = pnand %p1401_p7, %p275_p8  ;;  %s1392_s9 = sshll.u32 %s216_s24, 3 }
  0x56   : > { %s2218_s20 = scalar_lea.hbm %s3211_s0, %s1443_s16  ;;  %s220_s23 = scalar_lea.vmem [#allocation2], %s1392_s9 }
  0x57   : > { %s3263_s11 = scalar_select %p2209_p2, 1, 0 }
  0x58   : > { %s227_s21 = sshll.u32 %s220_s23, 4  ;;  %s2222_s13 = scalar_lea.sflag [#allocation3], %s216_s24  ;;  %s2220_s21 = int_to_ptr.vmem [resolvable:$true] %s227_s21 }
  0x59   : > { %s1667_s18 = scalar_lea.hbm %s2218_s20, 128  ;;  %p1669_p9 = pneg %p2155_p4 }
  0x5a   : > { %p1668_p11 = scmp.ne.s32.totalorder %s2218_s20, %s1667_s18  ;;  %s1672_s3 = scalar_lea.hbm %s3211_s0, 256 }
  0x5b   : > { %p1673_p6 = scmp.lt.u32.totalorder %s2218_s20, %s3211_s0  ;;  %p1674_p12 = scmp.lt.u32.totalorder %s1672_s3, %s1667_s18 }
  0x5c   : > { %p1670_p1 = pnand %p1669_p9, %p1668_p11  ;;  %p1676_p13 = scmp.lt.u32.totalorder %s1667_s18, %s2218_s20 }
  0x5d   : > { %p1675_p10 = por %p1674_p12, %p1673_p6 }
  0x5e   : > { %p1671_p3 = pneg %p1670_p1 }
  0x5f   : > { %p1677_p7 = por %p1676_p13, %p1675_p10 }
  0x61   : > { %p1678_p8 = pnand %p1677_p7, %p1671_p3 }
  0x63   : > { %1681 = shalt.err (!%p1678_p8)
}
  0x64   : > { %s1682_s24 = scalar_lea.vmem %s2220_s21, 128  ;;  %s1944_s9 = smov [#allocation2]  }
  0x65   : > { %p1683_p11 = scmp.ne.s32.totalorder %s2220_s21, %s1682_s24  ;;  %s1687_s23 = sshll.u32 %s1944_s9, 4  ;;  %s1688_s23 = int_to_ptr.vmem [resolvable:$false] %s1687_s23 }
  0x66   : > { %s1689_s26 = scalar_lea.vmem %s1688_s23, 256  ;;  %p1690_p2 = scmp.lt.s32.totalorder %s2220_s21, %s1688_s23 }
  0x67   : > { %p1685_p1 = pnand %p1683_p11, %p1669_p9  ;;  %p1691_p6 = scmp.lt.s32.totalorder %s1689_s26, %s1682_s24 }
  0x69   : > { %p1686_p5 = pneg %p1685_p1  ;;  %p1692_p12 = por %p1691_p6, %p1690_p2 }
  0x6b   : > { %p1693_p10 = pnand %p1692_p12, %p1686_p5 }
  0x6d   : > { %1696 = shalt.err (!%p1693_p10)
}
  0x6e   : > { %s1945_s30 = smov 64   ;;  %s1946_s18 = smov 4  }
  0x6f   : > { %1484 = dma.hbm_to_vmem [thread:$0]  (!%p2155_p4), %s2218_s20, 128, %s2220_s21, %s2222_s13, %s1945_s30, %s1945_s30, %s1946_s18  }
  0x70   : > { %s3264_s1 = sshll.u32 %s1933_s29, 11  ;;  %p3265_p2 = pneg %p2167_p0 }
  0x71   : > { %s2258_s24 = scalar_lea.hbm %s3213_s2, %s3264_s1  ;;  %s1702_s20 = scalar_lea.hbm %s3213_s2, 4096 }
  0x72   : > { %s1697_s9 = scalar_lea.hbm %s2258_s24, 2048  ;;  %p1703_p4 = scmp.lt.u32.totalorder %s2258_s24, %s3213_s2 }
  0x73   : > { %p1698_p5 = scmp.ne.s32.totalorder %s2258_s24, %s1697_s9  ;;  %p1704_p13 = scmp.lt.u32.totalorder %s1702_s20, %s1697_s9 }
  0x74   : > { %p1706_p8 = scmp.lt.u32.totalorder %s1697_s9, %s2258_s24 }
  0x75   : > { %p1700_p9 = pnand %p1698_p5, %p3265_p2  ;;  %p1705_p7 = por %p1704_p13, %p1703_p4 }
  0x77   : > { %p1701_p3 = pneg %p1700_p9  ;;  %p1707_p11 = por %p1706_p8, %p1705_p7 }
  0x79   : > { %p1708_p1 = pnand %p1707_p11, %p1701_p3 }
  0x7b   : > { %1711 = shalt.err (!%p1708_p1)
}
  0x7c   : > { %s1712_s26 = scalar_lea.vmem %s2205_s14, 2048  ;;  %p3266_p12 = pmov %p3265_p2 }
  0x7d   : > { %p1713_p6 = scmp.ne.s32.totalorder %s2205_s14, %s1712_s26  ;;  %s1947_s1 = smov [#allocation7]  }
  0x7e   : > { %s1717_s16 = sshll.u32 %s1947_s1, 4  ;;  %s1718_s16 = int_to_ptr.vmem [resolvable:$false] %s1717_s16 }
  0x7f   : > { %p1715_p10 = pnand %p1713_p6, %p3266_p12  ;;  %s1719_s3 = scalar_lea.vmem %s1718_s16, 4096 }
  0x80   : > { %p1720_p2 = scmp.lt.s32.totalorder %s2205_s14, %s1718_s16  ;;  %p1721_p9 = scmp.lt.s32.totalorder %s1719_s3, %s1712_s26 }
  0x81   : > { %p1716_p5 = pneg %p1715_p10 }
  0x82   : > { %p1722_p4 = por %p1721_p9, %p1720_p2 }
  0x84   : > { %p1723_p13 = pnand %p1722_p4, %p1716_p5 }
  0x86   : > { %1726 = shalt.err (!%p1723_p13)
}
  0x87   : > { %1490 = dma.hbm_to_vmem [thread:$0]  (!%p2167_p0), %s2258_s24, 2048, %s2205_s14, %s2175_s5, %s1945_s30, %s1945_s30, %s1946_s18  }
  0x88   : > { %p3267_p3 = scmp.ne.s32.totalorder %s3263_s11, 0 }
  0x89   : > { %s2290_s9 = sand.u32 (!%p3267_p3), 1, %s1917_s25   ;;  %p3268_p7 = scmp.ne.s32.totalorder (!%p3267_p3), %s3246_s15, 0 }
  0x8a   : > { %279 = sbr.rel (%p3267_p3) target bundleno = 4110 (0x100e), region = 32  ;;  %s1402_s17 = sshll.u32 (!%p3267_p3), %s2290_s9, 3 }
  0x8b   : > { %s282_s23 = scalar_lea.sflag (!%p3267_p3), [#allocation3], %s2290_s9  ;;  %s285_s20 = scalar_lea.vmem (!%p3267_p3), [#allocation2], %s1402_s17 }
  0x91   : > { %1868 = dma.done.wait (%p3268_p7), %s282_s23, 128  }
  0x92   : > { %1870 = vsyncadd (%p3268_p7), %s282_s23, 4294967168  ;;  %s290_s12 = sand.u32 1, %s2055_s7   ;;  %s292_s5 = sand.u32 1, %s1905_s22  }
  0x93   : > { %s2300_s14 = sshll.u32 %s292_s5, 1  ;;  %s291_s11 = scalar_lea.sflag [#allocation6], %s290_s12 }
  0x94   : > { %s294_s30 = scalar_lea.vmem [#allocation5], %s2300_s14  ;;  %p3269_p0 = scmp.ne.s32.totalorder %s3250_s10, 0 }
  0x96   : > { %1872 = dma.done.wait (%p3269_p0), %s291_s11, 2080  }
  0x97   : > { %1874 = vsyncadd (%p3269_p0), %s291_s11, 4294965216  ;;  %s1405_s15 = sshll.u32 %s2290_s9, 4  ;;  %s1404_s18 = sshll.u32 %s292_s5, 7  ;;  %v1636_v7 = vld [vmem:[%s285_s20] sm:$0xff]   ;;  %v394_v17 = vlaneseq  ;;  %v392_v20 = vld [vmem:[%s294_s30] sm:$0x3] }
  0x98   : > { %s2310_s24 = scalar_lea.vmem [#allocation7], %s1404_s18  ;;  %1467 = vmatprep.mubr.bf16.mxu0 %v1636_v7  ;;  %s347_s10 = sand.u32 1, %s1893_s19  }
  0x99   : > { %v1620_v0 = vld [vmem:[%s2310_s24 + $0x40] sm:$0xff]   ;;  %v1622_v2 = vld [vmem:[%s2310_s24 + $0x48] sm:$0xff]   ;;  %v1624_v4 = vld [vmem:[%s2310_s24 + $0x50] sm:$0xff]   ;;  %v395_v18 = vshrl.u32 %v394_v17, 7  ;;  %s1407_s21 = sshll.u32 %s347_s10, 4  ;;  %v565_v36 = vand.u32 127, %v394_v17 }
  0x9a   : > { %v1621_v1 = vld [vmem:[%s2310_s24] sm:$0xff]   ;;  %1451 = vmatprep.subr.bf16.mxu0 %v1620_v0  ;;  %v1623_v3 = vld [vmem:[%s2310_s24 + $0x8] sm:$0xff]   ;;  %v1625_v5 = vld [vmem:[%s2310_s24 + $0x10] sm:$0xff]   ;;  %s2343_s13 = scalar_lea.vmem [#allocation11], %s1407_s21  ;;  %s1427_s26 = sshll.u32 %s1925_s27, 8 }
  0x9b   : > { %1452 = vmatpush3.bf16.xpose.msra.mxu0 %v1621_v1  ;;  %v1626_v6 = vld [vmem:[%s2310_s24 + $0x58] sm:$0xff]   ;;  %v1628_v9 = vld [vmem:[%s2310_s24 + $0x60] sm:$0xff]   ;;  %v1630_v11 = vld [vmem:[%s2310_s24 + $0x68] sm:$0xff]   ;;  %v396_v19 = vsub.s32 0, %v395_v18  ;;  %v400_v21 = vsub.s32 1, %v395_v18  ;;  %v566_v37 = vadd.s32 128, %v565_v36  ;;  %v567_v38 = vstv %s1427_s26 }
  0x9c   : > { %1453 = vmatprep.subr.bf16.mxu0 %v1622_v2  ;;  %v1627_v8 = vld [vmem:[%s2310_s24 + $0x18] sm:$0xff]   ;;  %v1629_v10 = vld [vmem:[%s2310_s24 + $0x20] sm:$0xff]   ;;  %v1631_v12 = vld [vmem:[%s2310_s24 + $0x28] sm:$0xff]   ;;  %v2352_v39 = vadd.s32 %v567_v38, %v565_v36  ;;  %s2686_s1 = scalar_lea.vmem [#allocation8], %s1405_s15  ;;  %s2690_s16 = scalar_lea.vmem [#allocation9], %s1405_s15 }
  0x9d   : > { %v1632_v13 = vld [vmem:[%s2310_s24 + $0x70] sm:$0xff]   ;;  %v1634_v15 = vld [vmem:[%s2310_s24 + $0x78] sm:$0xff]   ;;  %v397_v22 = vrot.slane %v392_v20, %v396_v19  ;;  %v401_v23 = vrot.slane %v392_v20, %v400_v21  ;;  %v2354_v40 = vadd.s32 %v567_v38, %v566_v37  ;;  %p1428_p8 = scmp.ne.s32.totalorder %s1925_s27, 0 }
  0x9e   : > { %v1633_v14 = vld [vmem:[%s2310_s24 + $0x30] sm:$0xff]   ;;  %v1635_v16 = vld [vmem:[%s2310_s24 + $0x38] sm:$0xff]  }
  0xa3   : > { %1454 = vmatpush3.bf16.xpose.msra.mxu0 %v1623_v3 }
  0xa4   : > { %1455 = vmatprep.subr.bf16.mxu0 %v1624_v4 }
  0xab   : > { %1456 = vmatpush3.bf16.xpose.msra.mxu0 %v1625_v5 }
  0xac   : > { %1457 = vmatprep.subr.bf16.mxu0 %v1626_v6 }
  0xb3   : > { %1458 = vmatpush3.bf16.xpose.msra.mxu0 %v1627_v8 }
  0xb4   : > { %1459 = vmatprep.subr.bf16.mxu0 %v1628_v9 }
  0xbb   : > { %1460 = vmatpush3.bf16.xpose.msra.mxu0 %v1629_v10 }
  0xbc   : > { %1461 = vmatprep.subr.bf16.mxu0 %v1630_v11 }
  0xc3   : > { %1462 = vmatpush3.bf16.xpose.msra.mxu0 %v1631_v12 }
  0xc4   : > { %1463 = vmatprep.subr.bf16.mxu0 %v1632_v13 }
  0xcb   : > { %1464 = vmatpush3.bf16.xpose.msra.mxu0 %v1633_v14 }
  0xcc   : > { %1465 = vmatprep.subr.bf16.mxu0 %v1634_v15 }
  0xd3   : > { %1466 = vmatpush3.bf16.xpose.msra.mxu0 %v1635_v16 }
  0xda   : > { %1468 = vmatmul.mubr.bf16.vlgmr.msra.gmra.mrb[0].mxu0 %v1636_v7 }
 0x1ad   : > { %v540_v24 = vpop.f32.mrb[0].mxu0 }
 0x1ae   : > { %v2331_v25 = vadd.f32 %v540_v24, %v397_v22  ;;  %v542_v26 = vpop.f32.mrb[1].mxu0 }
 0x1af   : > { %v2333_v27 = vadd.f32 %v542_v26, %v401_v23  ;;  %v544_v28 = vpop.f32.mrb[2].mxu0 }
 0x1b0   : > { %v2335_v29 = vadd.f32 %v544_v28, %v397_v22  ;;  %v546_v30 = vpop.f32.mrb[3].mxu0 }
 0x1b1   : > { %v1446_v31 = vpack.c.bf16 %v2333_v27, %v2331_v25  ;;  %v2339_v32 = vadd.f32 %v546_v30, %v401_v23  ;;  %v570_v33 = vmax.f32 %v2331_v25, %v2333_v27 }
 0x1b3   : > { %561 = vst [vmem:[%s2343_s13] sm:$0xff] %v1446_v31  ;;  %v1447_v34 = vpack.c.bf16 %v2339_v32, %v2335_v29  ;;  %571 = vmax.xlane.f32.xlu0 %v570_v33  ;;  %v573_v35 = vmax.f32 %v2335_v29, %v2339_v32 }
 0x1b5   : > { %562 = vst [vmem:[%s2343_s13 + $0x8] sm:$0xff] %v1447_v34 }
 0x1b7   : > { %574 = vmax.xlane.f32.xlu0 %v573_v35 }
 0x240   : > { %v2356_v41 = vpop.xlane.xlu0 %571 }
 0x241   : > { %vm576_vm0 = vcmp.eq.f32.partialorder %v2331_v25, %v2356_v41  ;;  %vm577_vm1 = vcmp.eq.f32.partialorder %v2333_v27, %v2356_v41  ;;  %vm616_vm11 = vcmp.lt.f32.partialorder %v2331_v25, %v2356_v41  ;;  %vm617_vm13 = vcmp.lt.f32.partialorder %v2333_v27, %v2356_v41 }
 0x242   : > { %v580_v42 = vsel %vm576_vm0, %v2352_v39, 640  ;;  %v581_v43 = vsel %vm577_vm1, %v2354_v40, 640 }
 0x243   : > { %vm584_vm2 = vcmp.lt.s32.totalorder %v580_v42, %v581_v43 }
 0x244   : > { %v2370_v44 = vpop.xlane.xlu0 %574  ;;  %v585_v45 = vsel %vm584_vm2, %v580_v42, %v581_v43 }
 0x245   : > { %v587_v46 = vshra.s32 %v585_v45, 16  ;;  %vm578_vm3 = vcmp.eq.f32.partialorder %v2335_v29, %v2370_v44  ;;  %vm579_vm4 = vcmp.eq.f32.partialorder %v2339_v32, %v2370_v44  ;;  %v586_v53 = vand.u32 65535, %v585_v45 }
 0x246   : > { %v582_v47 = vsel %vm578_vm3, %v2352_v39, 640  ;;  %v583_v48 = vsel %vm579_vm4, %v2354_v40, 640 }
 0x247   : > { %v589_v49 = vcvt.s32.f32 %v587_v46  ;;  %vm600_vm5 = vcmp.lt.s32.totalorder %v582_v47, %v583_v48  ;;  %v588_v55 = vcvt.s32.f32 %v586_v53 }
 0x248   : > { %v601_v50 = vsel %vm600_vm5, %v582_v47, %v583_v48  ;;  %vm618_vm5 = vcmp.lt.f32.partialorder %v2335_v29, %v2370_v44 }
 0x249   : > { %590 = vmin.xlane.f32.xlu1 %v589_v49  ;;  %v603_v51 = vshra.s32 %v601_v50, 16  ;;  %v602_v56 = vand.u32 65535, %v601_v50 }
 0x24b   : > { %v605_v52 = vcvt.s32.f32 %v603_v51  ;;  %v604_v59 = vcvt.s32.f32 %v602_v56 }
 0x24d   : > { %606 = vmin.xlane.f32.xlu1 %v605_v52 }
 0x2d6   : > { %v591_v54 = vpop.xlane.xlu1 %590 }
 0x2d7   : > { %vm592_vm6 = vcmp.eq.f32.partialorder %v589_v49, %v591_v54  ;;  %v597_v61 = vcvt.f32.s32 %v591_v54 }
 0x2d8   : > { %v593_v57 = vsel %vm592_vm6, %v588_v55, inf }
 0x2d9   : > { %594 = vmin.xlane.f32.xlu0 %v593_v57  ;;  %v598_v63 = vshll.u32 %v597_v61, 16 }
 0x2da   : > { %v607_v58 = vpop.xlane.xlu1 %606 }
 0x2db   : > { %vm608_vm7 = vcmp.eq.f32.partialorder %v605_v52, %v607_v58  ;;  %v613_v0 = vcvt.f32.s32 %v607_v58 }
 0x2dc   : > { %v609_v60 = vsel %vm608_vm7, %v604_v59, inf  ;;  %vm619_vm7 = vcmp.lt.f32.partialorder %v2339_v32, %v2370_v44 }
 0x2dd   : > { %610 = vmin.xlane.f32.xlu1 %v609_v60  ;;  %v614_v4 = vshll.u32 %v613_v0, 16 }
 0x366   : > { %v595_v62 = vpop.xlane.xlu0 %594 }
 0x367   : > { %v596_v1 = vcvt.f32.s32 %v595_v62 }
 0x369   : > { %v2384_v2 = vadd.s32 %v598_v63, %v596_v1 }
 0x36a   : > { %v611_v3 = vpop.xlane.xlu1 %610 }
 0x36b   : > { %v612_v5 = vcvt.f32.s32 %v611_v3  ;;  %vm620_vm8 = vcmp.gt.s32.totalorder %v2352_v39, %v2384_v2  ;;  %vm621_vm9 = vcmp.gt.s32.totalorder %v2354_v40, %v2384_v2 }
 0x36c   : > { %vm624_vm10 = vmand %vm576_vm0, %vm620_vm8 }
 0x36d   : > { %v2393_v6 = vadd.s32 %v614_v4, %v612_v5  ;;  %vm625_vm12 = vmand %vm577_vm1, %vm621_vm9 }
 0x36e   : > { %vm2402_vm14 = vmor %vm616_vm11, %vm624_vm10 }
 0x36f   : > { %vm2406_vm15 = vmor %vm617_vm13, %vm625_vm12  ;;  %v632_v9 = vsel %vm2402_vm14, %v2331_v25, -3.4028235e+38  ;;  %vm622_vm0 = vcmp.gt.s32.totalorder %v2352_v39, %v2393_v6  ;;  %vm623_vm1 = vcmp.gt.s32.totalorder %v2354_v40, %v2393_v6 }
 0x370   : > { %v633_v10 = vsel %vm2406_vm15, %v2333_v27, -3.4028235e+38  ;;  %vm626_vm2 = vmand %vm578_vm3, %vm622_vm0 }
 0x371   : > { %v636_v11 = vmax.f32 %v632_v9, %v633_v10  ;;  %vm627_vm6 = vmand %vm579_vm4, %vm623_vm1 }
 0x372   : > { %vm2430_vm8 = vmor %vm618_vm5, %vm626_vm2 }
 0x373   : > { %637 = vmax.xlane.f32.xlu0 %v636_v11  ;;  %vm2434_vm9 = vmor %vm619_vm7, %vm627_vm6  ;;  %v634_v14 = vsel %vm2430_vm8, %v2335_v29, -3.4028235e+38 }
 0x374   : > { %v635_v15 = vsel %vm2434_vm9, %v2339_v32, -3.4028235e+38 }
 0x375   : > { %v639_v16 = vmax.f32 %v634_v14, %v635_v15 }
 0x377   : > { %640 = vmax.xlane.f32.xlu1 %v639_v16 }
 0x400   : > { %v2444_v17 = vpop.xlane.xlu0 %637 }
 0x401   : > { %vm642_vm3 = vcmp.eq.f32.partialorder %v2331_v25, %v2444_v17  ;;  %vm643_vm4 = vcmp.eq.f32.partialorder %v2333_v27, %v2444_v17 }
 0x402   : > { %vm646_vm10 = vmand %vm2402_vm14, %vm642_vm3 }
 0x403   : > { %vm647_vm11 = vmand %vm2406_vm15, %vm643_vm4  ;;  %v650_v18 = vsel %vm646_vm10, %v2352_v39, 640 }
 0x404   : > { %v2461_v19 = vpop.xlane.xlu1 %640  ;;  %v651_v20 = vsel %vm647_vm11, %v2354_v40, 640  ;;  %vm687_vm11 = vcmp.lt.f32.partialorder %v2333_v27, %v2444_v17 }
 0x405   : > { %vm654_vm12 = vcmp.lt.s32.totalorder %v650_v18, %v651_v20  ;;  %vm644_vm13 = vcmp.eq.f32.partialorder %v2335_v29, %v2461_v19  ;;  %vm645_vm0 = vcmp.eq.f32.partialorder %v2339_v32, %v2461_v19 }
 0x406   : > { %v655_v21 = vsel %vm654_vm12, %v650_v18, %v651_v20  ;;  %vm648_vm14 = vmand %vm2430_vm8, %vm644_vm13 }
 0x407   : > { %v657_v22 = vshra.s32 %v655_v21, 16  ;;  %vm649_vm15 = vmand %vm2434_vm9, %vm645_vm0  ;;  %v652_v23 = vsel %vm648_vm14, %v2352_v39, 640  ;;  %v656_v33 = vand.u32 65535, %v655_v21  ;;  %vm686_vm9 = vcmp.lt.f32.partialorder %v2331_v25, %v2444_v17 }
 0x408   : > { %v653_v24 = vsel %vm649_vm15, %v2354_v40, 640 }
 0x409   : > { %v659_v26 = vcvt.s32.f32 %v657_v22  ;;  %vm670_vm1 = vcmp.lt.s32.totalorder %v652_v23, %v653_v24  ;;  %v658_v35 = vcvt.s32.f32 %v656_v33 }
 0x40a   : > { %v671_v28 = vsel %vm670_vm1, %v652_v23, %v653_v24  ;;  %vm688_vm1 = vcmp.lt.f32.partialorder %v2335_v29, %v2461_v19 }
 0x40b   : > { %660 = vmin.xlane.f32.xlu0 %v659_v26  ;;  %v673_v30 = vshra.s32 %v671_v28, 16  ;;  %v672_v36 = vand.u32 65535, %v671_v28 }
 0x40d   : > { %v675_v31 = vcvt.s32.f32 %v673_v30  ;;  %v674_v42 = vcvt.s32.f32 %v672_v36 }
 0x40f   : > { %676 = vmin.xlane.f32.xlu1 %v675_v31 }
 0x498   : > { %v661_v34 = vpop.xlane.xlu0 %660 }
 0x499   : > { %vm662_vm2 = vcmp.eq.f32.partialorder %v659_v26, %v661_v34  ;;  %v667_v45 = vcvt.f32.s32 %v661_v34 }
 0x49a   : > { %v663_v37 = vsel %vm662_vm2, %v658_v35, inf }
 0x49b   : > { %664 = vmin.xlane.f32.xlu0 %v663_v37  ;;  %v668_v47 = vshll.u32 %v667_v45, 16 }
 0x49c   : > { %v677_v38 = vpop.xlane.xlu1 %676 }
 0x49d   : > { %vm678_vm5 = vcmp.eq.f32.partialorder %v675_v31, %v677_v38  ;;  %v683_v48 = vcvt.f32.s32 %v677_v38 }
 0x49e   : > { %v679_v43 = vsel %vm678_vm5, %v674_v42, inf  ;;  %vm689_vm5 = vcmp.lt.f32.partialorder %v2339_v32, %v2461_v19 }
 0x49f   : > { %680 = vmin.xlane.f32.xlu1 %v679_v43  ;;  %v684_v52 = vshll.u32 %v683_v48, 16 }
 0x528   : > { %v665_v46 = vpop.xlane.xlu0 %664 }
 0x529   : > { %v666_v49 = vcvt.f32.s32 %v665_v46 }
 0x52b   : > { %v2480_v50 = vadd.s32 %v668_v47, %v666_v49 }
 0x52c   : > { %v681_v51 = vpop.xlane.xlu1 %680 }
 0x52d   : > { %v682_v53 = vcvt.f32.s32 %v681_v51  ;;  %vm690_vm6 = vcmp.gt.s32.totalorder %v2352_v39, %v2480_v50  ;;  %vm691_vm7 = vcmp.gt.s32.totalorder %v2354_v40, %v2480_v50 }
 0x52e   : > { %vm694_vm8 = vmand %vm642_vm3, %vm690_vm6 }
 0x52f   : > { %v2489_v54 = vadd.s32 %v684_v52, %v682_v53  ;;  %vm695_vm10 = vmand %vm643_vm4, %vm691_vm7 }
 0x530   : > { %vm2498_vm12 = vmor %vm686_vm9, %vm694_vm8 }
 0x531   : > { %vm2502_vm14 = vmor %vm687_vm11, %vm695_vm10  ;;  %v702_v57 = vsel %vm2498_vm12, %v2331_v25, -3.4028235e+38  ;;  %vm692_vm3 = vcmp.gt.s32.totalorder %v2352_v39, %v2489_v54  ;;  %vm693_vm4 = vcmp.gt.s32.totalorder %v2354_v40, %v2489_v54 }
 0x532   : > { %v703_v58 = vsel %vm2502_vm14, %v2333_v27, -3.4028235e+38  ;;  %vm696_vm15 = vmand %vm644_vm13, %vm692_vm3 }
 0x533   : > { %v706_v59 = vmax.f32 %v702_v57, %v703_v58  ;;  %vm697_vm2 = vmand %vm645_vm0, %vm693_vm4 }
 0x534   : > { %vm2526_vm6 = vmor %vm688_vm1, %vm696_vm15 }
 0x535   : > { %707 = vmax.xlane.f32.xlu0 %v706_v59  ;;  %vm2530_vm7 = vmor %vm689_vm5, %vm697_vm2  ;;  %v704_v62 = vsel %vm2526_vm6, %v2335_v29, -3.4028235e+38  ;;  %vm826_vm2 = vcmask 7168   ;;  %vm829_vm5 = vcmask 15360  }
 0x536   : > { %v705_v63 = vsel %vm2530_vm7, %v2339_v32, -3.4028235e+38  ;;  %v838_v35 = vsel %vm826_vm2, %v2384_v2, %v2480_v50  ;;  %v839_v2 = vsel %vm826_vm2, %v2393_v6, %v2489_v54  ;;  %v827_v55 = vsel %vm826_vm2, %v2356_v41, %v2444_v17 }
 0x537   : > { %v709_v0 = vmax.f32 %v704_v62, %v705_v63  ;;  %v828_v41 = vsel %vm826_vm2, %v2370_v44, %v2461_v19 }
 0x539   : > { %710 = vmax.xlane.f32.xlu1 %v709_v0 }
 0x5c2   : > { %v2540_v1 = vpop.xlane.xlu0 %707 }
 0x5c3   : > { %vm712_vm13 = vcmp.eq.f32.partialorder %v2331_v25, %v2540_v1  ;;  %vm713_vm0 = vcmp.eq.f32.partialorder %v2333_v27, %v2540_v1  ;;  %v830_v56 = vsel %vm829_vm5, %v827_v55, %v2540_v1 }
 0x5c4   : > { %vm716_vm8 = vmand %vm2498_vm12, %vm712_vm13 }
 0x5c5   : > { %vm717_vm9 = vmand %vm2502_vm14, %vm713_vm0  ;;  %v720_v3 = vsel %vm716_vm8, %v2352_v39, 640 }
 0x5c6   : > { %v2557_v4 = vpop.xlane.xlu1 %710  ;;  %v721_v5 = vsel %vm717_vm9, %v2354_v40, 640  ;;  %vm756_vm9 = vcmp.lt.f32.partialorder %v2331_v25, %v2540_v1 }
 0x5c7   : > { %vm724_vm10 = vcmp.lt.s32.totalorder %v720_v3, %v721_v5  ;;  %vm714_vm11 = vcmp.eq.f32.partialorder %v2335_v29, %v2557_v4  ;;  %vm715_vm3 = vcmp.eq.f32.partialorder %v2339_v32, %v2557_v4 }
 0x5c8   : > { %v725_v7 = vsel %vm724_vm10, %v720_v3, %v721_v5  ;;  %vm718_vm12 = vmand %vm2526_vm6, %vm714_vm11 }
 0x5c9   : > { %v727_v8 = vshra.s32 %v725_v7, 16  ;;  %vm719_vm14 = vmand %vm2530_vm7, %vm715_vm3  ;;  %v722_v9 = vsel %vm718_vm12, %v2352_v39, 640  ;;  %v726_v15 = vand.u32 65535, %v725_v7  ;;  %vm757_vm12 = vcmp.lt.f32.partialorder %v2333_v27, %v2540_v1 }
 0x5ca   : > { %v723_v10 = vsel %vm719_vm14, %v2354_v40, 640 }
 0x5cb   : > { %v729_v11 = vcvt.s32.f32 %v727_v8  ;;  %vm740_vm4 = vcmp.lt.s32.totalorder %v722_v9, %v723_v10  ;;  %v728_v18 = vcvt.s32.f32 %v726_v15 }
 0x5cc   : > { %v741_v12 = vsel %vm740_vm4, %v722_v9, %v723_v10 }
 0x5cd   : > { %730 = vmin.xlane.f32.xlu0 %v729_v11  ;;  %v743_v13 = vshra.s32 %v741_v12, 16  ;;  %v742_v20 = vand.u32 65535, %v741_v12 }
 0x5cf   : > { %v745_v14 = vcvt.s32.f32 %v743_v13  ;;  %v744_v23 = vcvt.s32.f32 %v742_v20 }
 0x5d1   : > { %746 = vmin.xlane.f32.xlu1 %v745_v14 }
 0x65a   : > { %v731_v16 = vpop.xlane.xlu0 %730 }
 0x65b   : > { %vm732_vm15 = vcmp.eq.f32.partialorder %v729_v11, %v731_v16  ;;  %v737_v26 = vcvt.f32.s32 %v731_v16 }
 0x65c   : > { %v733_v21 = vsel %vm732_vm15, %v728_v18, inf }
 0x65d   : > { %734 = vmin.xlane.f32.xlu0 %v733_v21  ;;  %v738_v31 = vshll.u32 %v737_v26, 16 }
 0x65e   : > { %v747_v22 = vpop.xlane.xlu1 %746 }
 0x65f   : > { %vm748_vm1 = vcmp.eq.f32.partialorder %v745_v14, %v747_v22  ;;  %v753_v28 = vcvt.f32.s32 %v747_v22 }
 0x660   : > { %v749_v24 = vsel %vm748_vm1, %v744_v23, inf  ;;  %vm758_vm1 = vcmp.lt.f32.partialorder %v2335_v29, %v2557_v4 }
 0x661   : > { %750 = vmin.xlane.f32.xlu1 %v749_v24  ;;  %v754_v36 = vshll.u32 %v753_v28, 16 }
 0x6ea   : > { %v735_v30 = vpop.xlane.xlu0 %734 }
 0x6eb   : > { %v736_v33 = vcvt.f32.s32 %v735_v30 }
 0x6ed   : > { %v739_v34 = vadd.s32 %v738_v31, %v736_v33 }
 0x6ee   : > { %v751_v37 = vpop.xlane.xlu1 %750 }
 0x6ef   : > { %v2580_v38 = vsel %vm829_vm5, %v838_v35, %v739_v34  ;;  %v752_v42 = vcvt.f32.s32 %v751_v37  ;;  %vm760_vm6 = vcmp.gt.s32.totalorder %v2352_v39, %v739_v34  ;;  %vm761_vm7 = vcmp.gt.s32.totalorder %v2354_v40, %v739_v34 }
 0x6f0   : > { %vm764_vm8 = vmand %vm712_vm13, %vm760_vm6 }
 0x6f1   : > { %v755_v43 = vadd.s32 %v754_v36, %v752_v42  ;;  %vm765_vm10 = vmand %vm713_vm0, %vm761_vm7  ;;  %vm759_vm7 = vcmp.lt.f32.partialorder %v2339_v32, %v2557_v4 }
 0x6f2   : > { %vm2597_vm14 = vmor %vm756_vm9, %vm764_vm8 }
 0x6f3   : > { %v2602_v46 = vsel %vm829_vm5, %v839_v2, %v755_v43  ;;  %vm2604_vm13 = vmor %vm757_vm12, %vm765_vm10  ;;  %v772_v48 = vsel %vm2597_vm14, %v2331_v25, -3.4028235e+38  ;;  %vm762_vm0 = vcmp.gt.s32.totalorder %v2352_v39, %v755_v43  ;;  %vm763_vm4 = vcmp.gt.s32.totalorder %v2354_v40, %v755_v43 }
 0x6f4   : > { %v773_v6 = vsel %vm2604_vm13, %v2333_v27, -3.4028235e+38  ;;  %vm766_vm15 = vmand %vm714_vm11, %vm762_vm0  ;;  %vm832_vm11 = vcmask 23552  }
 0x6f5   : > { %v776_v49 = vmax.f32 %v772_v48, %v773_v6  ;;  %vm767_vm6 = vmand %vm715_vm3, %vm763_vm4  ;;  %vm835_vm3 = vcmask 31744  }
 0x6f6   : > { %vm2626_vm8 = vmor %vm758_vm1, %vm766_vm15 }
 0x6f7   : > { %777 = vmax.xlane.f32.xlu0 %v776_v49  ;;  %vm2630_vm9 = vmor %vm759_vm7, %vm767_vm6  ;;  %v774_v52 = vsel %vm2626_vm8, %v2335_v29, -3.4028235e+38 }
 0x6f8   : > { %v775_v53 = vsel %vm2630_vm9, %v2339_v32, -3.4028235e+38 }
 0x6f9   : > { %v779_v54 = vmax.f32 %v774_v52, %v775_v53 }
 0x6fb   : > { %780 = vmax.xlane.f32.xlu1 %v779_v54 }
 0x784   : > { %v778_v57 = vpop.xlane.xlu0 %777 }
 0x785   : > { %vm782_vm10 = vcmp.eq.f32.partialorder %v2331_v25, %v778_v57  ;;  %vm783_vm12 = vcmp.eq.f32.partialorder %v2333_v27, %v778_v57  ;;  %v833_v58 = vsel %vm832_vm11, %v830_v56, %v778_v57  ;;  %v831_v25 = vsel %vm829_vm5, %v828_v41, %v2557_v4 }
 0x786   : > { %vm786_vm0 = vmand %vm2597_vm14, %vm782_vm10  ;;  %v2651_v59 = vsel %vm835_vm3, %v833_v58, -3.4028235e+38 }
 0x787   : > { %vm787_vm4 = vmand %vm2604_vm13, %vm783_vm12  ;;  %v790_v17 = vsel %vm786_vm0, %v2352_v39, 640  ;;  %850 = vst [vmem:[%s2686_s1] sm:$0xff] (!%p1428_p8), %v2651_v59 }
 0x788   : > { %v781_v27 = vpop.xlane.xlu1 %780  ;;  %v791_v60 = vsel %vm787_vm4, %v2354_v40, 640 }
 0x789   : > { %vm784_vm14 = vcmp.eq.f32.partialorder %v2335_v29, %v781_v27  ;;  %vm785_vm15 = vcmp.eq.f32.partialorder %v2339_v32, %v781_v27  ;;  %v834_v61 = vsel %vm832_vm11, %v831_v25, %v781_v27  ;;  %vm794_vm1 = vcmp.lt.s32.totalorder %v790_v17, %v791_v60 }
 0x78a   : > { %vm788_vm13 = vmand %vm2626_vm8, %vm784_vm14  ;;  %v2668_v44 = vsel %vm835_vm3, %v834_v61, -3.4028235e+38  ;;  %v795_v19 = vsel %vm794_vm1, %v790_v17, %v791_v60 }
 0x78b   : > { %vm789_vm6 = vmand %vm2630_vm9, %vm785_vm15  ;;  %v797_v62 = vshra.s32 %v795_v19, 16  ;;  %v792_v63 = vsel %vm788_vm13, %v2352_v39, 640  ;;  %v796_v4 = vand.u32 65535, %v795_v19  ;;  %851 = vst [vmem:[%s2686_s1 + $0x8] sm:$0xff] (!%p1428_p8), %v2668_v44 }
 0x78c   : > { %v793_v29 = vsel %vm789_vm6, %v2354_v40, 640 }
 0x78d   : > { %v799_v0 = vcvt.s32.f32 %v797_v62  ;;  %vm810_vm7 = vcmp.lt.s32.totalorder %v792_v63, %v793_v29  ;;  %v798_v7 = vcvt.s32.f32 %v796_v4 }
 0x78e   : > { %v811_v32 = vsel %vm810_vm7, %v792_v63, %v793_v29 }
 0x78f   : > { %800 = vmin.xlane.f32.xlu0 %v799_v0  ;;  %v813_v1 = vshra.s32 %v811_v32, 16  ;;  %v812_v8 = vand.u32 65535, %v811_v32 }
 0x791   : > { %v815_v3 = vcvt.s32.f32 %v813_v1  ;;  %v814_v11 = vcvt.s32.f32 %v812_v8 }
 0x793   : > { %816 = vmin.xlane.f32.xlu1 %v815_v3 }
 0x81c   : > { %v801_v5 = vpop.xlane.xlu0 %800 }
 0x81d   : > { %vm802_vm8 = vcmp.eq.f32.partialorder %v799_v0, %v801_v5  ;;  %v807_v40 = vcvt.f32.s32 %v801_v5 }
 0x81e   : > { %v803_v9 = vsel %vm802_vm8, %v798_v7, inf }
 0x81f   : > { %804 = vmin.xlane.f32.xlu0 %v803_v9  ;;  %v808_v13 = vshll.u32 %v807_v40, 16 }
 0x820   : > { %v817_v10 = vpop.xlane.xlu1 %816 }
 0x821   : > { %vm818_vm9 = vcmp.eq.f32.partialorder %v815_v3, %v817_v10  ;;  %v823_v14 = vcvt.f32.s32 %v817_v10 }
 0x822   : > { %v819_v39 = vsel %vm818_vm9, %v814_v11, inf }
 0x823   : > { %820 = vmin.xlane.f32.xlu1 %v819_v39  ;;  %v824_v20 = vshll.u32 %v823_v14, 16 }
 0x8ac   : > { %v805_v12 = vpop.xlane.xlu0 %804 }
 0x8ad   : > { %v806_v15 = vcvt.f32.s32 %v805_v12 }
 0x8af   : > { %v809_v16 = vadd.s32 %v808_v13, %v806_v15 }
 0x8b0   : > { %v821_v18 = vpop.xlane.xlu1 %820  ;;  %849 = sbr.rel (%p1428_p8) target bundleno = 2232 (0x8b8), region = 48 }
 0x8b1   : > { %v842_v21 = vsel %vm832_vm11, %v2580_v38, %v809_v16  ;;  %v822_v22 = vcvt.f32.s32 %v821_v18 }
 0x8b2   : > { %v2677_v23 = vsel %vm835_vm3, %v842_v21, 640 }
 0x8b3   : > { %v825_v24 = vadd.s32 %v824_v20, %v822_v22  ;;  %852 = vst [vmem:[%s2690_s16] sm:$0xff] (!%p1428_p8), %v2677_v23 }
 0x8b5   : > { %v843_v26 = vsel %vm832_vm11, %v2602_v46, %v825_v24 }
 0x8b6   : > { %v2682_v28 = vsel %vm835_vm3, %v843_v26, 640 }
 0x8b7   : > { %853 = vst [vmem:[%s2690_s16 + $0x8] sm:$0xff] %v2682_v28 }
 0x8b8 PF: > { %p1429_p11 = scmp.le.s32.totalorder %s1925_s27, 0 }
 0x8b9   : > { %v2703_v30 = vld [vmem:[%s2686_s1] sm:$0xff] (!%p1429_p11)  ;;  %v2706_v31 = vld [vmem:[%s2686_s1 + $0x8] sm:$0xff] (!%p1429_p11) }
 0x8ba   : > { %857 = sbr.rel (%p1429_p11) target bundleno = 4033 (0xfc1), region = 52  ;;  %v862_v33 = vmax.f32 (!%p1429_p11), %v2651_v59, %v2703_v30  ;;  %v865_v34 = vmax.f32 (!%p1429_p11), %v2668_v44, %v2706_v31 }
 0x8bb   : > { %v2713_v35 = vld [vmem:[%s2690_s16] sm:$0xff] (!%p1429_p11) }
 0x8bc   : > { %863 = vmax.xlane.f32.xlu0 (!%p1429_p11), %v862_v33 }
 0x8be   : > { %v2730_v42 = vld [vmem:[%s2690_s16 + $0x8] sm:$0xff] (!%p1429_p11) }
 0x8c0   : > { %866 = vmax.xlane.f32.xlu0 (!%p1429_p11), %v865_v34 }
 0x949   : > { %v2715_v36 = vpop.xlane.xlu0 %863 }
 0x94a   : > { %vm868_vm10 = vcmp.eq.f32.partialorder %v2651_v59, %v2715_v36  ;;  %vm869_vm12 = vcmp.eq.f32.partialorder %v2703_v30, %v2715_v36  ;;  %vm908_vm9 = vcmp.lt.f32.partialorder %v2651_v59, %v2715_v36 }
 0x94b   : > { %v872_v37 = vsel %vm868_vm10, %v2677_v23, 640  ;;  %v873_v38 = vsel %vm869_vm12, %v2713_v35, 640 }
 0x94c   : > { %vm876_vm0 = vcmp.lt.s32.totalorder %v872_v37, %v873_v38 }
 0x94d   : > { %v2732_v43 = vpop.xlane.xlu0 %866  ;;  %v877_v2 = vsel %vm876_vm0, %v872_v37, %v873_v38 }
 0x94e   : > { %v879_v45 = vshra.s32 %v877_v2, 16  ;;  %vm870_vm4 = vcmp.eq.f32.partialorder %v2668_v44, %v2732_v43  ;;  %vm871_vm14 = vcmp.eq.f32.partialorder %v2706_v31, %v2732_v43  ;;  %v878_v51 = vand.u32 65535, %v877_v2 }
 0x94f   : > { %v874_v46 = vsel %vm870_vm4, %v2682_v28, 640  ;;  %v875_v47 = vsel %vm871_vm14, %v2730_v42, 640 }
 0x950   : > { %v881_v48 = vcvt.s32.f32 %v879_v45  ;;  %vm892_vm15 = vcmp.lt.s32.totalorder %v874_v46, %v875_v47  ;;  %v880_v53 = vcvt.s32.f32 %v878_v51 }
 0x951   : > { %v893_v6 = vsel %vm892_vm15, %v874_v46, %v875_v47  ;;  %vm909_vm15 = vcmp.lt.f32.partialorder %v2703_v30, %v2715_v36 }
 0x952   : > { %882 = vmin.xlane.f32.xlu1 %v881_v48  ;;  %v895_v49 = vshra.s32 %v893_v6, 16  ;;  %v894_v54 = vand.u32 65535, %v893_v6 }
 0x954   : > { %v897_v50 = vcvt.s32.f32 %v895_v49  ;;  %v896_v57 = vcvt.s32.f32 %v894_v54 }
 0x956   : > { %898 = vmin.xlane.f32.xlu1 %v897_v50 }
 0x9df   : > { %v883_v52 = vpop.xlane.xlu1 %882 }
 0x9e0   : > { %vm884_vm1 = vcmp.eq.f32.partialorder %v881_v48, %v883_v52  ;;  %v889_v41 = vcvt.f32.s32 %v883_v52 }
 0x9e1   : > { %v885_v55 = vsel %vm884_vm1, %v880_v53, inf }
 0x9e2   : > { %886 = vmin.xlane.f32.xlu0 %v885_v55  ;;  %v890_v25 = vshll.u32 %v889_v41, 16 }
 0x9e3   : > { %v899_v56 = vpop.xlane.xlu1 %898 }
 0x9e4   : > { %vm900_vm13 = vcmp.eq.f32.partialorder %v897_v50, %v899_v56  ;;  %v905_v27 = vcvt.f32.s32 %v899_v56 }
 0x9e5   : > { %v901_v58 = vsel %vm900_vm13, %v896_v57, inf }
 0x9e6   : > { %902 = vmin.xlane.f32.xlu1 %v901_v58  ;;  %v906_v62 = vshll.u32 %v905_v27, 16 }
 0xa6f   : > { %v887_v17 = vpop.xlane.xlu0 %886 }
 0xa70   : > { %v888_v60 = vcvt.f32.s32 %v887_v17 }
 0xa72   : > { %v2746_v61 = vadd.s32 %v890_v25, %v888_v60 }
 0xa73   : > { %v903_v19 = vpop.xlane.xlu1 %902 }
 0xa74   : > { %v904_v63 = vcvt.f32.s32 %v903_v19  ;;  %vm912_vm6 = vcmp.gt.s32.totalorder %v2677_v23, %v2746_v61  ;;  %vm913_vm7 = vcmp.gt.s32.totalorder %v2713_v35, %v2746_v61 }
 0xa75   : > { %vm916_vm8 = vmand %vm868_vm10, %vm912_vm6 }
 0xa76   : > { %v2755_v29 = vadd.s32 %v906_v62, %v904_v63  ;;  %vm917_vm0 = vmand %vm869_vm12, %vm913_vm7  ;;  %vm910_vm7 = vcmp.lt.f32.partialorder %v2668_v44, %v2732_v43 }
 0xa77   : > { %vm2764_vm1 = vmor %vm908_vm9, %vm916_vm8  ;;  %vm911_vm9 = vcmp.lt.f32.partialorder %v2706_v31, %v2732_v43 }
 0xa78   : > { %vm2768_vm13 = vmor %vm909_vm15, %vm917_vm0  ;;  %v924_v1 = vsel %vm2764_vm1, %v2651_v59, -3.4028235e+38  ;;  %vm914_vm10 = vcmp.gt.s32.totalorder %v2682_v28, %v2755_v29  ;;  %vm915_vm12 = vcmp.gt.s32.totalorder %v2730_v42, %v2755_v29 }
 0xa79   : > { %v925_v3 = vsel %vm2768_vm13, %v2703_v30, -3.4028235e+38  ;;  %vm918_vm6 = vmand %vm870_vm4, %vm914_vm10 }
 0xa7a   : > { %v928_v4 = vmax.f32 %v924_v1, %v925_v3  ;;  %vm919_vm8 = vmand %vm871_vm14, %vm915_vm12 }
 0xa7b   : > { %vm2792_vm0 = vmor %vm910_vm7, %vm918_vm6 }
 0xa7c   : > { %929 = vmax.xlane.f32.xlu0 %v928_v4  ;;  %vm2796_vm15 = vmor %vm911_vm9, %vm919_vm8  ;;  %v926_v8 = vsel %vm2792_vm0, %v2668_v44, -3.4028235e+38 }
 0xa7d   : > { %v927_v9 = vsel %vm2796_vm15, %v2706_v31, -3.4028235e+38 }
 0xa7e   : > { %v931_v10 = vmax.f32 %v926_v8, %v927_v9 }
 0xa80   : > { %932 = vmax.xlane.f32.xlu1 %v931_v10 }
 0xb09   : > { %v2806_v11 = vpop.xlane.xlu0 %929 }
 0xb0a   : > { %vm934_vm4 = vcmp.eq.f32.partialorder %v2651_v59, %v2806_v11  ;;  %vm935_vm14 = vcmp.eq.f32.partialorder %v2703_v30, %v2806_v11 }
 0xb0b   : > { %vm938_vm10 = vmand %vm2764_vm1, %vm934_vm4 }
 0xb0c   : > { %vm939_vm12 = vmand %vm2768_vm13, %vm935_vm14  ;;  %v942_v39 = vsel %vm938_vm10, %v2677_v23, 640 }
 0xb0d   : > { %v2823_v40 = vpop.xlane.xlu1 %932  ;;  %v943_v12 = vsel %vm939_vm12, %v2713_v35, 640 }
 0xb0e   : > { %vm946_vm6 = vcmp.lt.s32.totalorder %v942_v39, %v943_v12  ;;  %vm936_vm7 = vcmp.eq.f32.partialorder %v2668_v44, %v2823_v40  ;;  %vm937_vm8 = vcmp.eq.f32.partialorder %v2706_v31, %v2823_v40 }
 0xb0f   : > { %v947_v13 = vsel %vm946_vm6, %v942_v39, %v943_v12  ;;  %vm940_vm1 = vmand %vm2792_vm0, %vm936_vm7 }
 0xb10   : > { %v949_v14 = vshra.s32 %v947_v13, 16  ;;  %vm941_vm13 = vmand %vm2796_vm15, %vm937_vm8  ;;  %v944_v15 = vsel %vm940_vm1, %v2682_v28, 640  ;;  %v948_v24 = vand.u32 65535, %v947_v13  ;;  %vm978_vm1 = vcmp.lt.f32.partialorder %v2651_v59, %v2806_v11 }
 0xb11   : > { %v945_v16 = vsel %vm941_vm13, %v2730_v42, 640 }
 0xb12   : > { %v951_v18 = vcvt.s32.f32 %v949_v14  ;;  %vm962_vm9 = vcmp.lt.s32.totalorder %v944_v15, %v945_v16  ;;  %v950_v33 = vcvt.s32.f32 %v948_v24 }
 0xb13   : > { %v963_v20 = vsel %vm962_vm9, %v944_v15, %v945_v16  ;;  %vm979_vm9 = vcmp.lt.f32.partialorder %v2703_v30, %v2806_v11 }
 0xb14   : > { %952 = vmin.xlane.f32.xlu0 %v951_v18  ;;  %v965_v21 = vshra.s32 %v963_v20, 16  ;;  %v964_v34 = vand.u32 65535, %v963_v20 }
 0xb16   : > { %v967_v22 = vcvt.s32.f32 %v965_v21  ;;  %v966_v2 = vcvt.s32.f32 %v964_v34 }
 0xb18   : > { %968 = vmin.xlane.f32.xlu1 %v967_v22 }
 0xba1   : > { %v953_v26 = vpop.xlane.xlu0 %952 }
 0xba2   : > { %vm954_vm0 = vcmp.eq.f32.partialorder %v951_v18, %v953_v26  ;;  %v959_v46 = vcvt.f32.s32 %v953_v26 }
 0xba3   : > { %v955_v37 = vsel %vm954_vm0, %v950_v33, inf }
 0xba4   : > { %956 = vmin.xlane.f32.xlu0 %v955_v37  ;;  %v960_v48 = vshll.u32 %v959_v46, 16 }
 0xba5   : > { %v969_v38 = vpop.xlane.xlu1 %968 }
 0xba6   : > { %vm970_vm15 = vcmp.eq.f32.partialorder %v967_v22, %v969_v38  ;;  %v975_v6 = vcvt.f32.s32 %v969_v38 }
 0xba7   : > { %v971_v45 = vsel %vm970_vm15, %v966_v2, inf }
 0xba8   : > { %972 = vmin.xlane.f32.xlu1 %v971_v45  ;;  %v976_v52 = vshll.u32 %v975_v6, 16 }
 0xc31   : > { %v957_v47 = vpop.xlane.xlu0 %956 }
 0xc32   : > { %v958_v49 = vcvt.f32.s32 %v957_v47 }
 0xc34   : > { %v2842_v50 = vadd.s32 %v960_v48, %v958_v49 }
 0xc35   : > { %v973_v51 = vpop.xlane.xlu1 %972 }
 0xc36   : > { %v974_v53 = vcvt.f32.s32 %v973_v51  ;;  %vm982_vm10 = vcmp.gt.s32.totalorder %v2677_v23, %v2842_v50  ;;  %vm983_vm12 = vcmp.gt.s32.totalorder %v2713_v35, %v2842_v50  ;;  %v1126_v2 = vsel %vm826_vm2, %v2746_v61, %v2842_v50 }
 0xc37   : > { %vm986_vm6 = vmand %vm934_vm4, %vm982_vm10 }
 0xc38   : > { %v2851_v54 = vadd.s32 %v976_v52, %v974_v53  ;;  %vm987_vm13 = vmand %vm935_vm14, %vm983_vm12  ;;  %vm980_vm12 = vcmp.lt.f32.partialorder %v2668_v44, %v2823_v40 }
 0xc39   : > { %vm2860_vm0 = vmor %vm978_vm1, %vm986_vm6  ;;  %vm981_vm1 = vcmp.lt.f32.partialorder %v2706_v31, %v2823_v40 }
 0xc3a   : > { %vm2864_vm15 = vmor %vm979_vm9, %vm987_vm13  ;;  %v994_v57 = vsel %vm2860_vm0, %v2651_v59, -3.4028235e+38  ;;  %vm984_vm4 = vcmp.gt.s32.totalorder %v2682_v28, %v2851_v54  ;;  %vm985_vm14 = vcmp.gt.s32.totalorder %v2730_v42, %v2851_v54  ;;  %v1127_v48 = vsel %vm826_vm2, %v2755_v29, %v2851_v54 }
 0xc3b   : > { %v995_v58 = vsel %vm2864_vm15, %v2703_v30, -3.4028235e+38  ;;  %vm988_vm10 = vmand %vm936_vm7, %vm984_vm4 }
 0xc3c   : > { %v998_v41 = vmax.f32 %v994_v57, %v995_v58  ;;  %vm989_vm6 = vmand %vm937_vm8, %vm985_vm14  ;;  %v1118_v57 = vsel %vm826_vm2, %v2715_v36, %v2806_v11 }
 0xc3d   : > { %vm2888_vm13 = vmor %vm980_vm12, %vm988_vm10 }
 0xc3e   : > { %999 = vmax.xlane.f32.xlu0 %v998_v41  ;;  %vm2892_vm9 = vmor %vm981_vm1, %vm989_vm6  ;;  %v996_v27 = vsel %vm2888_vm13, %v2668_v44, -3.4028235e+38 }
 0xc3f   : > { %v997_v60 = vsel %vm2892_vm9, %v2706_v31, -3.4028235e+38 }
 0xc40   : > { %v1001_v19 = vmax.f32 %v996_v27, %v997_v60 }
 0xc42   : > { %1002 = vmax.xlane.f32.xlu1 %v1001_v19 }
 0xccb   : > { %v2902_v62 = vpop.xlane.xlu0 %999 }
 0xccc   : > { %vm1004_vm7 = vcmp.eq.f32.partialorder %v2651_v59, %v2902_v62  ;;  %vm1005_vm8 = vcmp.eq.f32.partialorder %v2703_v30, %v2902_v62  ;;  %v1120_v58 = vsel %vm829_vm5, %v1118_v57, %v2902_v62 }
 0xccd   : > { %vm1008_vm4 = vmand %vm2860_vm0, %vm1004_vm7 }
 0xcce   : > { %vm1009_vm14 = vmand %vm2864_vm15, %vm1005_vm8  ;;  %v1012_v63 = vsel %vm1008_vm4, %v2677_v23, 640 }
 0xccf   : > { %v2919_v0 = vpop.xlane.xlu1 %1002  ;;  %v1013_v32 = vsel %vm1009_vm14, %v2713_v35, 640 }
 0xcd0   : > { %vm1016_vm10 = vcmp.lt.s32.totalorder %v1012_v63, %v1013_v32  ;;  %vm1006_vm12 = vcmp.eq.f32.partialorder %v2668_v44, %v2919_v0  ;;  %vm1007_vm6 = vcmp.eq.f32.partialorder %v2706_v31, %v2919_v0 }
 0xcd1   : > { %v1017_v1 = vsel %vm1016_vm10, %v1012_v63, %v1013_v32  ;;  %vm1010_vm0 = vmand %vm2888_vm13, %vm1006_vm12 }
 0xcd2   : > { %v1019_v3 = vshra.s32 %v1017_v1, 16  ;;  %vm1011_vm15 = vmand %vm2892_vm9, %vm1007_vm6  ;;  %v1014_v4 = vsel %vm1010_vm0, %v2682_v28, 640  ;;  %v1018_v39 = vand.u32 65535, %v1017_v1  ;;  %vm1048_vm0 = vcmp.lt.f32.partialorder %v2651_v59, %v2902_v62 }
 0xcd3   : > { %v1015_v5 = vsel %vm1011_vm15, %v2730_v42, 640 }
 0xcd4   : > { %v1021_v7 = vcvt.s32.f32 %v1019_v3  ;;  %vm1032_vm1 = vcmp.lt.s32.totalorder %v1014_v4, %v1015_v5  ;;  %v1020_v13 = vcvt.s32.f32 %v1018_v39 }
 0xcd5   : > { %v1033_v8 = vsel %vm1032_vm1, %v1014_v4, %v1015_v5  ;;  %vm1049_vm1 = vcmp.lt.f32.partialorder %v2703_v30, %v2902_v62 }
 0xcd6   : > { %1022 = vmin.xlane.f32.xlu0 %v1021_v7  ;;  %v1035_v9 = vshra.s32 %v1033_v8, 16  ;;  %v1034_v14 = vand.u32 65535, %v1033_v8 }
 0xcd8   : > { %v1037_v10 = vcvt.s32.f32 %v1035_v9  ;;  %v1036_v18 = vcvt.s32.f32 %v1034_v14 }
 0xcda   : > { %1038 = vmin.xlane.f32.xlu1 %v1037_v10 }
 0xd63   : > { %v1023_v12 = vpop.xlane.xlu0 %1022 }
 0xd64   : > { %vm1024_vm13 = vcmp.eq.f32.partialorder %v1021_v7, %v1023_v12  ;;  %v1029_v21 = vcvt.f32.s32 %v1023_v12 }
 0xd65   : > { %v1025_v15 = vsel %vm1024_vm13, %v1020_v13, inf }
 0xd66   : > { %1026 = vmin.xlane.f32.xlu0 %v1025_v15  ;;  %v1030_v26 = vshll.u32 %v1029_v21, 16 }
 0xd67   : > { %v1039_v16 = vpop.xlane.xlu1 %1038 }
 0xd68   : > { %vm1040_vm9 = vcmp.eq.f32.partialorder %v1037_v10, %v1039_v16  ;;  %v1045_v22 = vcvt.f32.s32 %v1039_v16 }
 0xd69   : > { %v1041_v20 = vsel %vm1040_vm9, %v1036_v18, inf }
 0xd6a   : > { %1042 = vmin.xlane.f32.xlu1 %v1041_v20  ;;  %v1046_v37 = vshll.u32 %v1045_v22, 16 }
 0xdf3   : > { %v1027_v24 = vpop.xlane.xlu0 %1026 }
 0xdf4   : > { %v1028_v33 = vcvt.f32.s32 %v1027_v24 }
 0xdf6   : > { %v1031_v34 = vadd.s32 %v1030_v26, %v1028_v33 }
 0xdf7   : > { %v1043_v38 = vpop.xlane.xlu1 %1042 }
 0xdf8   : > { %v1044_v45 = vcvt.f32.s32 %v1043_v38  ;;  %vm1052_vm4 = vcmp.gt.s32.totalorder %v2677_v23, %v1031_v34  ;;  %vm1053_vm14 = vcmp.gt.s32.totalorder %v2713_v35, %v1031_v34  ;;  %v2944_v46 = vsel %vm829_vm5, %v1126_v2, %v1031_v34 }
 0xdf9   : > { %vm1056_vm10 = vmand %vm1004_vm7, %vm1052_vm4 }
 0xdfa   : > { %v1047_v47 = vadd.s32 %v1046_v37, %v1044_v45  ;;  %vm1057_vm15 = vmand %vm1005_vm8, %vm1053_vm14  ;;  %vm1050_vm14 = vcmp.lt.f32.partialorder %v2668_v44, %v2919_v0 }
 0xdfb   : > { %vm2956_vm13 = vmor %vm1048_vm0, %vm1056_vm10  ;;  %vm1051_vm0 = vcmp.lt.f32.partialorder %v2706_v31, %v2919_v0 }
 0xdfc   : > { %vm2963_vm7 = vmor %vm1049_vm1, %vm1057_vm15  ;;  %v1064_v49 = vsel %vm2956_vm13, %v2651_v59, -3.4028235e+38  ;;  %vm1054_vm8 = vcmp.gt.s32.totalorder %v2682_v28, %v1047_v47  ;;  %vm1055_vm9 = vcmp.gt.s32.totalorder %v2730_v42, %v1047_v47  ;;  %v2973_v50 = vsel %vm829_vm5, %v1127_v48, %v1047_v47 }
 0xdfd   : > { %v1065_v51 = vsel %vm2963_vm7, %v2703_v30, -3.4028235e+38  ;;  %vm1058_vm4 = vmand %vm1006_vm12, %vm1054_vm8 }
 0xdfe   : > { %v1068_v29 = vmax.f32 %v1064_v49, %v1065_v51  ;;  %vm1059_vm10 = vmand %vm1007_vm6, %vm1055_vm9 }
 0xdff   : > { %vm2988_vm15 = vmor %vm1050_vm14, %vm1058_vm4 }
 0xe00   : > { %1069 = vmax.xlane.f32.xlu0 %v1068_v29  ;;  %vm2992_vm1 = vmor %vm1051_vm0, %vm1059_vm10  ;;  %v1066_v54 = vsel %vm2988_vm15, %v2668_v44, -3.4028235e+38 }
 0xe01   : > { %v1067_v55 = vsel %vm2992_vm1, %v2706_v31, -3.4028235e+38 }
 0xe02   : > { %v1071_v56 = vmax.f32 %v1066_v54, %v1067_v55 }
 0xe04   : > { %1072 = vmax.xlane.f32.xlu1 %v1071_v56 }
 0xe8d   : > { %v1070_v41 = vpop.xlane.xlu0 %1069 }
 0xe8e   : > { %vm1074_vm12 = vcmp.eq.f32.partialorder %v2651_v59, %v1070_v41  ;;  %vm1075_vm6 = vcmp.eq.f32.partialorder %v2703_v30, %v1070_v41  ;;  %v1122_v17 = vsel %vm832_vm11, %v1120_v58, %v1070_v41  ;;  %v1119_v59 = vsel %vm826_vm2, %v2732_v43, %v2823_v40 }
 0xe8f   : > { %vm1078_vm8 = vmand %vm2956_vm13, %vm1074_vm12  ;;  %v1124_v25 = vsel %vm835_vm3, %v1122_v17, -3.4028235e+38  ;;  %v1121_v30 = vsel %vm829_vm5, %v1119_v59, %v2919_v0 }
 0xe90   : > { %vm1079_vm9 = vmand %vm2963_vm7, %vm1075_vm6  ;;  %v1082_v36 = vsel %vm1078_vm8, %v2677_v23, 640  ;;  %1134 = vst [vmem:[%s2686_s1] sm:$0xff] %v1124_v25 }
 0xe91   : > { %v1073_v11 = vpop.xlane.xlu1 %1072  ;;  %v1083_v27 = vsel %vm1079_vm9, %v2713_v35, 640 }
 0xe92   : > { %vm1076_vm13 = vcmp.eq.f32.partialorder %v2668_v44, %v1073_v11  ;;  %vm1077_vm4 = vcmp.eq.f32.partialorder %v2706_v31, %v1073_v11  ;;  %v1123_v60 = vsel %vm832_vm11, %v1121_v30, %v1073_v11  ;;  %vm1086_vm7 = vcmp.lt.s32.totalorder %v1082_v36, %v1083_v27 }
 0xe93   : > { %vm1080_vm14 = vmand %vm2988_vm15, %vm1076_vm13  ;;  %v1125_v23 = vsel %vm835_vm3, %v1123_v60, -3.4028235e+38  ;;  %v1087_v19 = vsel %vm1086_vm7, %v1082_v36, %v1083_v27 }
 0xe94   : > { %vm1081_vm2 = vmand %vm2992_vm1, %vm1077_vm4  ;;  %v1084_v43 = vsel %vm1080_vm14, %v2682_v28, 640  ;;  %1135 = vst [vmem:[%s2686_s1 + $0x8] sm:$0xff] %v1125_v23  ;;  %v1089_v35 = vshra.s32 %v1087_v19, 16  ;;  %v1088_v0 = vand.u32 65535, %v1087_v19 }
 0xe95   : > { %v1085_v44 = vsel %vm1081_vm2, %v2730_v42, 640 }
 0xe96   : > { %v1091_v40 = vcvt.s32.f32 %v1089_v35  ;;  %vm1102_vm5 = vcmp.lt.s32.totalorder %v1084_v43, %v1085_v44  ;;  %v1090_v1 = vcvt.s32.f32 %v1088_v0 }
 0xe97   : > { %v1103_v31 = vsel %vm1102_vm5, %v1084_v43, %v1085_v44 }
 0xe98   : > { %1092 = vmin.xlane.f32.xlu0 %v1091_v40  ;;  %v1105_v62 = vshra.s32 %v1103_v31, 16  ;;  %v1104_v3 = vand.u32 65535, %v1103_v31 }
 0xe9a   : > { %v1107_v63 = vcvt.s32.f32 %v1105_v62  ;;  %v1106_v28 = vcvt.s32.f32 %v1104_v3 }
 0xe9c   : > { %1108 = vmin.xlane.f32.xlu1 %v1107_v63 }
 0xf25   : > { %v1093_v32 = vpop.xlane.xlu0 %1092 }
 0xf26   : > { %vm1094_vm10 = vcmp.eq.f32.partialorder %v1091_v40, %v1093_v32  ;;  %v1099_v42 = vcvt.f32.s32 %v1093_v32 }
 0xf27   : > { %v1095_v4 = vsel %vm1094_vm10, %v1090_v1, inf }
 0xf28   : > { %1096 = vmin.xlane.f32.xlu0 %v1095_v4  ;;  %v1100_v9 = vshll.u32 %v1099_v42, 16 }
 0xf29   : > { %v1109_v5 = vpop.xlane.xlu1 %1108 }
 0xf2a   : > { %vm1110_vm0 = vcmp.eq.f32.partialorder %v1107_v63, %v1109_v5  ;;  %v1115_v10 = vcvt.f32.s32 %v1109_v5 }
 0xf2b   : > { %v1111_v7 = vsel %vm1110_vm0, %v1106_v28, inf }
 0xf2c   : > { %1112 = vmin.xlane.f32.xlu1 %v1111_v7  ;;  %v1116_v14 = vshll.u32 %v1115_v10, 16 }
 0xfb5   : > { %v1097_v8 = vpop.xlane.xlu0 %1096 }
 0xfb6   : > { %v1098_v39 = vcvt.f32.s32 %v1097_v8 }
 0xfb8   : > { %v1101_v12 = vadd.s32 %v1100_v9, %v1098_v39 }
 0xfb9   : > { %v1113_v13 = vpop.xlane.xlu1 %1112 }
 0xfba   : > { %v1130_v15 = vsel %vm832_vm11, %v2944_v46, %v1101_v12  ;;  %v1114_v16 = vcvt.f32.s32 %v1113_v13 }
 0xfbb   : > { %v1132_v18 = vsel %vm835_vm3, %v1130_v15, 640 }
 0xfbc   : > { %1136 = vst [vmem:[%s2690_s16] sm:$0xff] %v1132_v18  ;;  %v1117_v20 = vadd.s32 %v1116_v14, %v1114_v16 }
 0xfbe   : > { %v1131_v21 = vsel %vm832_vm11, %v2973_v50, %v1117_v20 }
 0xfbf   : > { %v1133_v22 = vsel %vm835_vm3, %v1131_v21, 640 }
 0xfc0   : > { %1137 = vst [vmem:[%s2690_s16 + $0x8] sm:$0xff] %v1133_v22 }
 0xfc1 PF: > { %s1448_s3 = sshll.u32 %s1929_s28, 8  ;;  %s1178_s5 = sshll.u32 %s2690_s16, 4  ;;  %s3051_s5 = int_to_ptr.vmem [resolvable:$true] %s1178_s5 }
 0xfc2   : > { %s3048_s20 = scalar_lea.hbm %s3215_s4, %s1448_s3  ;;  %s3055_s14 = scalar_lea.sflag [#allocation10], %s290_s12 }
 0xfc3   : > { %s1727_s11 = scalar_lea.vmem %s3051_s5, 256  ;;  %p3318_p6 = scmp.ne.s32.totalorder %s3252_s8, 0 }
 0xfc4   : > { %p1728_p1 = scmp.ne.s32.totalorder %s3051_s5, %s1727_s11  ;;  %s1948_s30 = smov [#allocation9]  }
 0xfc5   : > { %s1731_s15 = sshll.u32 %s1948_s30, 4  ;;  %s1732_s15 = int_to_ptr.vmem [resolvable:$false] %s1731_s15 }
 0xfc6   : > { %p1729_p12 = pnand %p1728_p1, %p3318_p6  ;;  %s1733_s18 = scalar_lea.vmem %s1732_s15, 512 }
 0xfc7   : > { %p1734_p5 = scmp.lt.s32.totalorder %s3051_s5, %s1732_s15  ;;  %p1735_p2 = scmp.lt.s32.totalorder %s1733_s18, %s1727_s11 }
 0xfc8   : > { %p1730_p10 = pneg %p1729_p12 }
 0xfc9   : > { %p1736_p9 = por %p1735_p2, %p1734_p5 }
 0xfcb   : > { %p1737_p4 = pnand %p1736_p9, %p1730_p10 }
 0xfcd   : > { %1740 = shalt.err (!%p1737_p4)
}
 0xfce   : > { %s1741_s7 = scalar_lea.hbm %s3048_s20, 256  ;;  %s1745_s10 = scalar_lea.hbm %s3215_s4, 512 }
 0xfcf   : > { %p1742_p13 = scmp.ne.s32.totalorder %s3048_s20, %s1741_s7  ;;  %p1746_p0 = scmp.lt.u32.totalorder %s3048_s20, %s3215_s4 }
 0xfd0   : > { %p1747_p8 = scmp.lt.u32.totalorder %s1745_s10, %s1741_s7  ;;  %p1749_p1 = scmp.lt.u32.totalorder %s1741_s7, %s3048_s20 }
 0xfd1   : > { %p1743_p3 = pnand %p1742_p13, %p3318_p6 }
 0xfd2   : > { %p1748_p11 = por %p1747_p8, %p1746_p0 }
 0xfd3   : > { %p1744_p7 = pneg %p1743_p3 }
 0xfd4   : > { %p1750_p12 = por %p1749_p1, %p1748_p11 }
 0xfd6   : > { %p1751_p10 = pnand %p1750_p12, %p1744_p7 }
 0xfd8   : > { %1754 = shalt.err (!%p1751_p10)
}
 0xfd9   : > { %s1949_s16 = smov 128   ;;  %s1950_s17 = smov 8  }
 0xfda   : > { %1476 = dma.vmem_to_hbm [thread:$0]  (%p3318_p6), %s3051_s5, 256, %s3048_s20, %s3055_s14, %s1949_s16, %s1949_s16, %s1950_s17  }
 0xfdb   : > { %s3319_s30 = sld [smem:[#allocation31_spill]]  ;;  %s1162_s7 = sshll.u32 %s2686_s1, 4  ;;  %s3090_s7 = int_to_ptr.vmem [resolvable:$true] %s1162_s7 }
 0xfdc   : > { %s1438_s12 = sshll.u32 %s1925_s27, 1  ;;  %s1139_s24 = scalar_lea.sflag [#allocation4], %s2290_s9 }
 0xfdd   : > { %s1755_s10 = scalar_lea.vmem %s3090_s7, 256  ;;  %s1951_s20 = smov [#allocation8]  }
 0xfde   : > { %p1756_p5 = scmp.ne.s32.totalorder %s3090_s7, %s1755_s10  ;;  %s1759_s5 = sshll.u32 %s1951_s20, 4  ;;  %s1760_s5 = int_to_ptr.vmem [resolvable:$false] %s1759_s5 }
 0xfdf   : > { %s1761_s21 = scalar_lea.vmem %s1760_s5, 512  ;;  %p1762_p4 = scmp.lt.s32.totalorder %s3090_s7, %s1760_s5 }
 0xfe0   : > { %p1757_p2 = pnand %p1756_p5, %p3318_p6  ;;  %p1763_p13 = scmp.lt.s32.totalorder %s1761_s21, %s1755_s10 }
 0xfe1   : > { %s3320_s15 = smov %s3319_s30  ;;  %s3087_s18 = scalar_lea.hbm %s3319_s30, %s1448_s3 }
 0xfe2   : > { %p1758_p9 = pneg %p1757_p2  ;;  %p1764_p3 = por %p1763_p13, %p1762_p4 }
 0xfe4   : > { %p1765_p7 = pnand %p1764_p3, %p1758_p9 }
 0xfe6   : > { %1768 = shalt.err (!%p1765_p7)
}
 0xfe7   : > { %s1769_s1 = scalar_lea.hbm %s3087_s18, 256  ;;  %s1773_s23 = scalar_lea.hbm %s3320_s15, 512 }
 0xfe8   : > { %p1770_p0 = scmp.ne.s32.totalorder %s3087_s18, %s1769_s1  ;;  %p1774_p1 = scmp.lt.u32.totalorder %s3087_s18, %s3320_s15 }
 0xfe9   : > { %p1775_p12 = scmp.lt.u32.totalorder %s1773_s23, %s1769_s1  ;;  %p1777_p5 = scmp.lt.u32.totalorder %s1769_s1, %s3087_s18 }
 0xfea   : > { %p1771_p8 = pnand %p1770_p0, %p3318_p6 }
 0xfeb   : > { %p1776_p10 = por %p1775_p12, %p1774_p1 }
 0xfec   : > { %p1772_p11 = pneg %p1771_p8 }
 0xfed   : > { %p1778_p2 = por %p1777_p5, %p1776_p10 }
 0xfef   : > { %p1779_p9 = pnand %p1778_p2, %p1772_p11 }
 0xff1   : > { %1782 = shalt.err (!%p1779_p9)
}
 0xff2   : > { %s3321_s10 = sld [smem:[#allocation28_spill]]  ;;  %s1450_s20 = sshll.u32 %s1929_s28, 3 }
 0xff3   : > { %1475 = dma.vmem_to_hbm [thread:$0]  (%p3318_p6), %s3090_s7, 256, %s3087_s18, %s1139_s24, %s1949_s16, %s1949_s16, %s1950_s17  }
 0xff4   : > { %s1197_s5 = sshll.u32 %s2343_s13, 4  ;;  %s1194_s21 = sadd.s32 %s1450_s20, %s1438_s12  ;;  %s3124_s5 = int_to_ptr.vmem [resolvable:$true] %s1197_s5 }
 0xff5   : > { %s1440_s8 = sshll.u32 %s1194_s21, 6  ;;  %s3322_s9 = sld [smem:[#allocation32_spill]] }
 0xff6   : > { %s1783_s23 = scalar_lea.vmem %s3124_s5, 256  ;;  %s1952_s28 = smov [#allocation11]  }
 0xff7   : > { %p1784_p4 = scmp.ne.s32.totalorder %s3124_s5, %s1783_s23  ;;  %s1787_s13 = sshll.u32 %s1952_s28, 4  ;;  %s1788_s13 = int_to_ptr.vmem [resolvable:$false] %s1787_s13 }
 0xff8   : > { %p3323_p13 = scmp.ne.s32.totalorder %s3321_s10, 0  ;;  %s1789_s27 = scalar_lea.vmem %s1788_s13, 512 }
 0xff9   : > { %p1790_p7 = scmp.lt.s32.totalorder %s3124_s5, %s1788_s13  ;;  %p1791_p0 = scmp.lt.s32.totalorder %s1789_s27, %s1783_s23 }
 0xffa   : > { %p1785_p3 = pnand %p1784_p4, %p3323_p13 }
 0xffb   : > { %s3129_s26 = scalar_lea.hbm %s3322_s9, %s1440_s8  ;;  %p1792_p8 = por %p1791_p0, %p1790_p7 }
 0xffc   : > { %p1786_p6 = pneg %p1785_p3 }
 0xffe   : > { %p1793_p11 = pnand %p1792_p8, %p1786_p6 }
0x1000   : > { %1796 = shalt.err (!%p1793_p11)
}
0x1001   : > { %s1797_s18 = scalar_lea.hbm %s3129_s26, 256  ;;  %s1801_s24 = scalar_lea.hbm %s3322_s9, 1024 }
0x1002   : > { %p1798_p1 = scmp.ne.s32.totalorder %s3129_s26, %s1797_s18  ;;  %p1802_p5 = scmp.lt.u32.totalorder %s3129_s26, %s3322_s9 }
0x1003   : > { %p1803_p2 = scmp.lt.u32.totalorder %s1801_s24, %s1797_s18  ;;  %p1805_p4 = scmp.lt.u32.totalorder %s1797_s18, %s3129_s26 }
0x1004   : > { %p1799_p12 = pnand %p1798_p1, %p3323_p13 }
0x1005   : > { %p1804_p9 = por %p1803_p2, %p1802_p5 }
0x1006   : > { %p1800_p10 = pneg %p1799_p12 }
0x1007   : > { %p1806_p3 = por %p1805_p4, %p1804_p9 }
0x1009   : > { %p1807_p6 = pnand %p1806_p3, %p1800_p10 }
0x100b   : > { %1810 = shalt.err (!%p1807_p6)
}
0x100c   : > { %s1953_s20 = smov 256  }
0x100d   : > { %1477 = dma.vmem_to_hbm [thread:$0]  (%p3323_p13), %s3124_s5, 256, %s3129_s26, %s3055_s14, %s1949_s16, %s1953_s20, %s1950_s17  }
0x100e PF: > { %s3324_s21 = sld [smem:[#allocation19_spill]]  ;;  %s3325_s8 = sld [smem:[#allocation26_spill]] }
0x100f   : > { %p1502_p7 = scmp.ge.s32.totalorder %s1941_s6, 2 }
0x1014   : > { %s1212_s1 = sand.u32 1, %s3324_s21   ;;  %p3326_p0 = scmp.ne.s32.totalorder %s3325_s8, 0 }
0x1015   : > { %s1213_s3 = scalar_lea.sflag [#allocation4], %s1212_s1 }
0x1016   : > { %p1492_p8 = pnand %p1502_p7, %p3326_p0 }
0x1018   : > { %1876 = dma.done.wait (!%p1492_p8), %s1213_s3, 256  }
0x1019   : > { %1878 = vsyncadd (!%p1492_p8), %s1213_s3, 4294967040  ;;  %s3327_s23 = sadd.s32 4294967294, %s1941_s6  }
0x101a   : > { %s1221_s10 = sand.u32 1, %s3327_s23  }
0x101b   : > { %s1222_s28 = scalar_lea.sflag [#allocation10], %s1221_s10 }
0x101c   : > { %1880 = dma.done.wait (!%p1492_p8), %s1222_s28, 256  }
0x101d   : > { %1882 = vsyncadd (!%p1492_p8), %s1222_s28, 4294967040  ;;  %s3328_s13 = sld [smem:[#allocation29_spill]] }
0x1023   : > { %p3329_p11 = scmp.ne.s32.totalorder %s3328_s13, 0 }
0x1025   : > { %p1498_p13 = pnand %p1502_p7, %p3329_p11 }
0x1027   : > { %1884 = dma.done.wait (!%p1498_p13), %s1222_s28, 256  }
0x1028   : > { %1886 = vsyncadd (!%p1498_p13), %s1222_s28, 4294967040  ;;  %s28_s6 = sadd.s32 1, %s1941_s6   ;;  %s3331_s16 = sld [smem:[#allocation17_spill]] }
0x1029   : > { %p3164_p1 = scmp.ge.s32.totalorder %s28_s6, 6   ;;  %s3332_s20 = sld [smem:[#allocation27_spill]] }
0x102a   : > { %s3333_s17 = sld [smem:[#allocation18_spill]]  ;;  %s3334_s23 = sld [smem:[#allocation24_spill]] }
0x102b   : > { %s3335_s5 = sld [smem:[#allocation20_spill]]  ;;  %s3336_s26 = sld [smem:[#allocation25_spill]] }
0x102c   : > { %s3337_s28 = sld [smem:[#allocation21_spill]]  ;;  %s3338_s7 = sld [smem:[#allocation22_spill]] }
0x102d   : > { %s3339_s30 = sld [smem:[#allocation23_spill]]  ;;  %s3340_s18 = smov %s1893_s19 }
0x102e   : > { %s3341_s19 = smov %s3331_s16  ;;  %s3342_s21 = smov %s1905_s22 }
0x102f   : > { %s3344_s24 = smov %s1917_s25  ;;  %s3346_s27 = smov %s1933_s29 }
0x1030   : > { %s3343_s22 = smov %s3333_s17  ;;  %27 = sbr.rel (!%p3164_p1) target bundleno = 18 (0x12), region = 141 }
0x1031   : > { %s3345_s25 = smov %s3335_s5 }
0x1032   : > { %s3347_s29 = smov %s3338_s7 }
0x1037   :  { %1236 = vsyncpa [#allocation3], 1 }
0x1038   :  { %1238 = vsyncpa [#allocation3 + $0x1], 1 }
0x1039   :  { %1239 = vsyncpa [#allocation6], 1 }
0x103a   :  { %1241 = vsyncpa [#allocation6 + $0x1], 1 }
0x103b   :  { %1242 = vsyncpa [#allocation4], 1 }
0x103c   :  { %1244 = vsyncpa [#allocation4 + $0x1], 1 }
0x103d   :  { %1245 = vsyncpa [#allocation10], 1 }
0x103e   :  { %1247 = vsyncpa [#allocation10 + $0x1], 1 }

</bundles_post_ra>
